<compile_context>
chip_gen: v6e
topology: v6e:2x2x1
jax: 0.10.0
libtpu: 0.0.40
codegen_flags: <defaults>
</compile_context>

<pallas_src>
import jax
import jax.numpy as jnp
from jax.experimental import pallas as pl
from jax.experimental.pallas import tpu as pltpu


def _round_up(x, m):
    return ((x + m - 1) // m) * m


def conv_model2_kernel(x_ref, w1_ref, b1_ref, mask_ref, w2_ref, b2_ref, o_ref):
    """Fused ConvModel2 forward for one batch tile.

    x_ref:    [TB, Lpad, Cin]  raw activations, seq zero-padded to Lp + K - 1
    w1_ref:   [K, Cin, Cout]   conv weight, one [Cin, Cout] slab per tap
    b1_ref:   [1, Cout]        conv bias (f32)
    mask_ref: [Lp, 1]          1/Lout on valid time rows, 0 on padded rows (f32)
    w2_ref:   [Cout, Tpad]     prediction weight, task lanes padded to 128 (f32)
    b2_ref:   [1, Tpad]        prediction bias (f32)
    o_ref:    [TB, Tpad]       lane-dense output slab
    """
    TB, _, Cin = x_ref.shape
    K = w1_ref.shape[0]
    Cout = w1_ref.shape[2]
    Lp = mask_ref.shape[0]
    M = TB * Lp

    # Conv1d('valid') as K shifted-tap MXU matmuls, accumulated in f32.
    acc = None
    for k in range(K):                                  # static unroll, K small
        xk = x_ref[:, k:k + Lp, :].reshape(M, Cin)      # layout-preserving
        pk = jnp.dot(xk, w1_ref[k], preferred_element_type=jnp.float32)
        acc = pk if acc is None else acc + pk

    h = jnp.maximum(acc + b1_ref[...], 0.0)             # bias + ReLU (VPU, f32)

    # Masked global average pooling: scale valid rows by 1/Lout (padded rows
    # by 0 so relu(bias) on them cannot leak in), then sum over time (XLU).
    h3 = h.reshape(TB, Lp, Cout) * mask_ref[...]
    pooled = jnp.sum(h3, axis=1)                        # [TB, Cout], f32

    # Prediction head; task lanes are 128-padded so the store is unmasked.
    out = jnp.dot(pooled, w2_ref[...], preferred_element_type=jnp.float32) + b2_ref[...]
    o_ref[...] = out.astype(o_ref.dtype)


def conv_model2_forward(x, conv_w, conv_b, pred_w, pred_b, *,
                        batch_tile=128, compute_dtype=jnp.bfloat16):
    """ConvModel2 (default config) forward pass via one fused Pallas kernel.

    x:      [B, aa_seq_len, aa_encoding_len]  (channels-last, as fed to PyTorch)
    conv_w: [Cout, Cin, K]                    (torch Conv1d weight layout)
    conv_b: [Cout]
    pred_w: [num_tasks, Cout]                 (torch Linear weight layout)
    pred_b: [num_tasks]
    Returns [B, num_tasks] float32.
    """
    B, L, Cin = x.shape
    Cout, _, K = conv_w.shape
    T = pred_w.shape[0]
    Lout = L - K + 1                      # 'valid' padding, dilation = 1
    assert Lout > 0, "sequence shorter than kernel"

    # Valid-conv output length rounded to 16 sublanes (covers both the f32
    # (8,128) and bf16 (16,128) tilings so the in-kernel reshape stays free).
    Lp = _round_up(Lout, 16)
    Lpad = Lp + K - 1                     # seq length the kernel slices from

    # Batch tile: multiple of 8 sublanes, and sized so the grid always has
    # >= 2 steps (keeps both v7x TensorCores busy on the "parallel" axis).
    TB = max(8, min(_round_up(batch_tile, 8), _round_up(pl.cdiv(B, 2), 8)))
    steps = max(2, pl.cdiv(B, TB))
    Bp = steps * TB

    Tpad = _round_up(T, 128)              # lane-dense output

    # ---- layout plumbing on the RAW activations (no im2col expansion) ----
    xp = jnp.pad(x.astype(jnp.float32),
                 ((0, Bp - B), (0, Lpad - L), (0, 0))).astype(compute_dtype)

    # conv weight [Cout, Cin, K] -> [K, Cin, Cout]; bias -> [1, Cout]
    w1 = jnp.transpose(conv_w, (2, 1, 0)).astype(compute_dtype)
    b1 = conv_b.reshape(1, Cout).astype(jnp.float32)

    # per-time-row pooling mask: 1/Lout on valid rows, 0 on padded rows
    mask = ((jnp.arange(Lp) < Lout).astype(jnp.float32) / Lout).reshape(Lp, 1)

    # prediction weight [T, Cout] -> [Cout, Tpad]; bias -> [1, Tpad]
    w2 = jnp.pad(jnp.transpose(pred_w, (1, 0)).astype(jnp.float32),
                 ((0, 0), (0, Tpad - T)))
    b2 = jnp.pad(pred_b.reshape(1, T).astype(jnp.float32),
                 ((0, 0), (0, Tpad - T)))

    itemsize = jnp.dtype(compute_dtype).itemsize
    flops = (2 * Bp * Lp * Cin * Cout * K        # conv tap matmuls (MXU)
             + 2 * Bp * Cout * Tpad              # prediction matmul (MXU)
             + 5 * Bp * Lp * Cout)               # bias/relu/mask/sum (VPU/XLU)
    bytes_accessed = (Bp * Lpad * Cin * itemsize         # activation stream
                      + K * Cin * Cout * itemsize        # conv weight
                      + Cout * 4 + Lp * 4                # conv bias + mask
                      + Cout * Tpad * 4 + Tpad * 4       # prediction params
                      + Bp * Tpad * 4)                   # output

    out = pl.pallas_call(
        conv_model2_kernel,
        out_shape=jax.ShapeDtypeStruct((Bp, Tpad), jnp.float32),
        grid=(Bp // TB,),
        in_specs=[
            pl.BlockSpec((TB, Lpad, Cin), lambda i: (i, 0, 0)),  # x streams per tile
            pl.BlockSpec((K, Cin, Cout), lambda i: (0, 0, 0)),   # conv weight resident
            pl.BlockSpec((1, Cout), lambda i: (0, 0)),           # conv bias resident
            pl.BlockSpec((Lp, 1), lambda i: (0, 0)),             # pooling mask resident
            pl.BlockSpec((Cout, Tpad), lambda i: (0, 0)),        # pred weight resident
            pl.BlockSpec((1, Tpad), lambda i: (0, 0)),           # pred bias resident
        ],
        out_specs=pl.BlockSpec((TB, Tpad), lambda i: (i, 0)),
        compiler_params=pltpu.CompilerParams(
            dimension_semantics=("parallel",),                   # megacore on v7x
            vmem_limit_bytes=32 * 1024 * 1024,                   # safe on v5e/v6e/v7x
        ),
        cost_estimate=pl.CostEstimate(flops=flops, transcendentals=0,
                                      bytes_accessed=bytes_accessed),
    )(xp, w1, b1, mask, w2, b2)

    return out[:B, :T]                    # drop batch + task padding


def reference_forward(x, conv_w, conv_b, pred_w, pred_b):
    """Pure-JAX reference replicating the PyTorch ConvModel2 default forward."""
    B, L, Cin = x.shape
    Cout, _, K = conv_w.shape
    Lout = L - K + 1
    y = jnp.zeros((B, Lout, Cout), jnp.float32)
    for k in range(K):
        # y[b,t,co] += sum_ci x[b,t+k,ci] * conv_w[co,ci,k]
        y = y + jnp.einsum('bti,oi->bto', x[:, k:k + Lout, :], conv_w[:, :, k])
    y = jnp.maximum(y + conv_b, 0.0)       # conv bias + ReLU
    pooled = jnp.mean(y, axis=1)           # global average pooling over length
    return pooled @ pred_w.T + pred_b      # prediction linear


def init_params(key, aa_encoding_len, kernel_size, out_channels, num_tasks):
    """Uniform +/- 1/sqrt(fan_in) init, mimicking torch Conv1d / Linear defaults."""
    k1, k2, k3, k4 = jax.random.split(key, 4)
    fan1 = aa_encoding_len * kernel_size
    b1 = 1.0 / (fan1 ** 0.5)
    b2 = 1.0 / (out_channels ** 0.5)
    conv_w = jax.random.uniform(k1, (out_channels, aa_encoding_len, kernel_size),
                                jnp.float32, -b1, b1)
    conv_b = jax.random.uniform(k2, (out_channels,), jnp.float32, -b1, b1)
    pred_w = jax.random.uniform(k3, (num_tasks, out_channels), jnp.float32, -b2, b2)
    pred_b = jax.random.uniform(k4, (num_tasks,), jnp.float32, -b2, b2)
    return conv_w, conv_b, pred_w, pred_b


if __name__ == "__main__":
    # ConvModel2(num_tasks=4, aa_seq_len=32, aa_encoding_len=16, defaults:
    # kernel_sizes=[7], out_channels=[128], padding='valid',
    # global_average_pooling=True, relu, no norm/dropout/embedding).
    key = jax.random.PRNGKey(0)
    kx, kx2, kp = jax.random.split(key, 3)

    batch = 4
    aa_seq_len = 32
    aa_encoding_len = 16
    out_channels = 128
    kernel_size = 7
    num_tasks = 4

    x = jax.random.normal(kx, (batch, aa_seq_len, aa_encoding_len), jnp.float32)
    conv_w, conv_b, pred_w, pred_b = init_params(
        kp, aa_encoding_len, kernel_size, out_channels, num_tasks)
    ref = reference_forward(x, conv_w, conv_b, pred_w, pred_b)

    # f32 compute path (PyTorch-matching numerics)
    out_f32 = jax.block_until_ready(
        conv_model2_forward(x, conv_w, conv_b, pred_w, pred_b,
                            compute_dtype=jnp.float32))
    assert out_f32.shape == (batch, num_tasks)
    assert jnp.allclose(out_f32, ref, atol=1e-2, rtol=1e-2), "f32 mismatch"

    # default bf16 conv-matmul path (f32 accumulation), looser tolerance
    out_bf16 = jax.block_until_ready(
        conv_model2_forward(x, conv_w, conv_b, pred_w, pred_b))
    assert out_bf16.shape == (batch, num_tasks)
    assert jnp.allclose(out_bf16, ref, atol=1e-1, rtol=1e-1), "bf16 mismatch"

    # multi-tile grid path (batch spans several batch tiles)
    xb = jax.random.normal(kx2, (20, aa_seq_len, aa_encoding_len), jnp.float32)
    out_b = jax.block_until_ready(
        conv_model2_forward(xb, conv_w, conv_b, pred_w, pred_b,
                            batch_tile=8, compute_dtype=jnp.float32))
    ref_b = reference_forward(xb, conv_w, conv_b, pred_w, pred_b)
    assert out_b.shape == (20, num_tasks)
    assert jnp.allclose(out_b, ref_b, atol=1e-2, rtol=1e-2), "multi-tile mismatch"

    print("KERNEL_OK")
</pallas_src>

<mosaic_0001>
module attributes {stable_mosaic.version = 11 : i64} {
  func.func @conv_model2_kernel(%arg0: i32, %arg1: memref<8x38x16xf32, #tpu.memory_space<vmem>>, %arg2: memref<7x16x128xf32, #tpu.memory_space<vmem>>, %arg3: memref<1x128xf32, #tpu.memory_space<vmem>>, %arg4: memref<32x1xf32, #tpu.memory_space<vmem>>, %arg5: memref<128x128xf32, #tpu.memory_space<vmem>>, %arg6: memref<1x128xf32, #tpu.memory_space<vmem>>, %arg7: memref<8x128xf32, #tpu.memory_space<vmem>>) attributes {dimension_semantics = [#tpu.dimension_semantics<parallel>], iteration_bounds = array<i64: 2>, scalar_prefetch = 0 : i64, scratch_operands = 0 : i64, tpu.core_type = #tpu.core_type<tc>, window_params = [{transform_indices = @transform_0, window_bounds = array<i64: 8, 38, 16>}, {pipeline_mode = #tpu.pipeline_mode<synchronous>, transform_indices = @transform_1, window_bounds = array<i64: 7, 16, 128>}, {pipeline_mode = #tpu.pipeline_mode<synchronous>, transform_indices = @transform_2, window_bounds = array<i64: 1, 128>}, {pipeline_mode = #tpu.pipeline_mode<synchronous>, transform_indices = @transform_3, window_bounds = array<i64: 32, 1>}, {pipeline_mode = #tpu.pipeline_mode<synchronous>, transform_indices = @transform_4, window_bounds = array<i64: 128, 128>}, {pipeline_mode = #tpu.pipeline_mode<synchronous>, transform_indices = @transform_5, window_bounds = array<i64: 1, 128>}, {transform_indices = @transform_6, window_bounds = array<i64: 8, 128>}]} {
    %c0 = arith.constant 0 : index
    %c0_0 = arith.constant 0 : index
    %c0_1 = arith.constant 0 : index
    %0 = vector.load %arg1[%c0, %c0_0, %c0_1] : memref<8x38x16xf32, #tpu.memory_space<vmem>>, vector<8x32x16xf32>
    %1 = vector.shape_cast %0 : vector<8x32x16xf32> to vector<256x16xf32>
    %c0_2 = arith.constant 0 : index
    %c0_3 = arith.constant 0 : index
    %c0_4 = arith.constant 0 : index
    %2 = vector.load %arg2[%c0_2, %c0_3, %c0_4] : memref<7x16x128xf32, #tpu.memory_space<vmem>>, vector<1x16x128xf32>
    %3 = vector.shape_cast %2 : vector<1x16x128xf32> to vector<16x128xf32>
    %cst = arith.constant dense<0.000000e+00> : vector<256x128xf32>
    %4 = tpu.matmul %1, %3, %cst {dimension_numbers = #tpu.dot_dimension_numbers<[1], [0], [0], [1], [0, 0, 1, 1], [], []>} : vector<256x16xf32>, vector<16x128xf32>, vector<256x128xf32> -> vector<256x128xf32>
    %c0_5 = arith.constant 0 : index
    %c1 = arith.constant 1 : index
    %c0_6 = arith.constant 0 : index
    %5 = vector.load %arg1[%c0_5, %c1, %c0_6] : memref<8x38x16xf32, #tpu.memory_space<vmem>>, vector<8x32x16xf32>
    %6 = vector.shape_cast %5 : vector<8x32x16xf32> to vector<256x16xf32>
    %c1_7 = arith.constant 1 : index
    %c0_8 = arith.constant 0 : index
    %c0_9 = arith.constant 0 : index
    %7 = vector.load %arg2[%c1_7, %c0_8, %c0_9] : memref<7x16x128xf32, #tpu.memory_space<vmem>>, vector<1x16x128xf32>
    %8 = vector.shape_cast %7 : vector<1x16x128xf32> to vector<16x128xf32>
    %cst_10 = arith.constant dense<0.000000e+00> : vector<256x128xf32>
    %9 = tpu.matmul %6, %8, %cst_10 {dimension_numbers = #tpu.dot_dimension_numbers<[1], [0], [0], [1], [0, 0, 1, 1], [], []>} : vector<256x16xf32>, vector<16x128xf32>, vector<256x128xf32> -> vector<256x128xf32>
    %10 = arith.addf %4, %9 : vector<256x128xf32>
    %c0_11 = arith.constant 0 : index
    %c2 = arith.constant 2 : index
    %c0_12 = arith.constant 0 : index
    %11 = vector.load %arg1[%c0_11, %c2, %c0_12] : memref<8x38x16xf32, #tpu.memory_space<vmem>>, vector<8x32x16xf32>
    %12 = vector.shape_cast %11 : vector<8x32x16xf32> to vector<256x16xf32>
    %c2_13 = arith.constant 2 : index
    %c0_14 = arith.constant 0 : index
    %c0_15 = arith.constant 0 : index
    %13 = vector.load %arg2[%c2_13, %c0_14, %c0_15] : memref<7x16x128xf32, #tpu.memory_space<vmem>>, vector<1x16x128xf32>
    %14 = vector.shape_cast %13 : vector<1x16x128xf32> to vector<16x128xf32>
    %cst_16 = arith.constant dense<0.000000e+00> : vector<256x128xf32>
    %15 = tpu.matmul %12, %14, %cst_16 {dimension_numbers = #tpu.dot_dimension_numbers<[1], [0], [0], [1], [0, 0, 1, 1], [], []>} : vector<256x16xf32>, vector<16x128xf32>, vector<256x128xf32> -> vector<256x128xf32>
    %16 = arith.addf %10, %15 : vector<256x128xf32>
    %c0_17 = arith.constant 0 : index
    %c3 = arith.constant 3 : index
    %c0_18 = arith.constant 0 : index
    %17 = vector.load %arg1[%c0_17, %c3, %c0_18] : memref<8x38x16xf32, #tpu.memory_space<vmem>>, vector<8x32x16xf32>
    %18 = vector.shape_cast %17 : vector<8x32x16xf32> to vector<256x16xf32>
    %c3_19 = arith.constant 3 : index
    %c0_20 = arith.constant 0 : index
    %c0_21 = arith.constant 0 : index
    %19 = vector.load %arg2[%c3_19, %c0_20, %c0_21] : memref<7x16x128xf32, #tpu.memory_space<vmem>>, vector<1x16x128xf32>
    %20 = vector.shape_cast %19 : vector<1x16x128xf32> to vector<16x128xf32>
    %cst_22 = arith.constant dense<0.000000e+00> : vector<256x128xf32>
    %21 = tpu.matmul %18, %20, %cst_22 {dimension_numbers = #tpu.dot_dimension_numbers<[1], [0], [0], [1], [0, 0, 1, 1], [], []>} : vector<256x16xf32>, vector<16x128xf32>, vector<256x128xf32> -> vector<256x128xf32>
    %22 = arith.addf %16, %21 : vector<256x128xf32>
    %c0_23 = arith.constant 0 : index
    %c4 = arith.constant 4 : index
    %c0_24 = arith.constant 0 : index
    %23 = vector.load %arg1[%c0_23, %c4, %c0_24] : memref<8x38x16xf32, #tpu.memory_space<vmem>>, vector<8x32x16xf32>
    %24 = vector.shape_cast %23 : vector<8x32x16xf32> to vector<256x16xf32>
    %c4_25 = arith.constant 4 : index
    %c0_26 = arith.constant 0 : index
    %c0_27 = arith.constant 0 : index
    %25 = vector.load %arg2[%c4_25, %c0_26, %c0_27] : memref<7x16x128xf32, #tpu.memory_space<vmem>>, vector<1x16x128xf32>
    %26 = vector.shape_cast %25 : vector<1x16x128xf32> to vector<16x128xf32>
    %cst_28 = arith.constant dense<0.000000e+00> : vector<256x128xf32>
    %27 = tpu.matmul %24, %26, %cst_28 {dimension_numbers = #tpu.dot_dimension_numbers<[1], [0], [0], [1], [0, 0, 1, 1], [], []>} : vector<256x16xf32>, vector<16x128xf32>, vector<256x128xf32> -> vector<256x128xf32>
    %28 = arith.addf %22, %27 : vector<256x128xf32>
    %c0_29 = arith.constant 0 : index
    %c5 = arith.constant 5 : index
    %c0_30 = arith.constant 0 : index
    %29 = vector.load %arg1[%c0_29, %c5, %c0_30] : memref<8x38x16xf32, #tpu.memory_space<vmem>>, vector<8x32x16xf32>
    %30 = vector.shape_cast %29 : vector<8x32x16xf32> to vector<256x16xf32>
    %c5_31 = arith.constant 5 : index
    %c0_32 = arith.constant 0 : index
    %c0_33 = arith.constant 0 : index
    %31 = vector.load %arg2[%c5_31, %c0_32, %c0_33] : memref<7x16x128xf32, #tpu.memory_space<vmem>>, vector<1x16x128xf32>
    %32 = vector.shape_cast %31 : vector<1x16x128xf32> to vector<16x128xf32>
    %cst_34 = arith.constant dense<0.000000e+00> : vector<256x128xf32>
    %33 = tpu.matmul %30, %32, %cst_34 {dimension_numbers = #tpu.dot_dimension_numbers<[1], [0], [0], [1], [0, 0, 1, 1], [], []>} : vector<256x16xf32>, vector<16x128xf32>, vector<256x128xf32> -> vector<256x128xf32>
    %34 = arith.addf %28, %33 : vector<256x128xf32>
    %c0_35 = arith.constant 0 : index
    %c6 = arith.constant 6 : index
    %c0_36 = arith.constant 0 : index
    %35 = vector.load %arg1[%c0_35, %c6, %c0_36] : memref<8x38x16xf32, #tpu.memory_space<vmem>>, vector<8x32x16xf32>
    %36 = vector.shape_cast %35 : vector<8x32x16xf32> to vector<256x16xf32>
    %c6_37 = arith.constant 6 : index
    %c0_38 = arith.constant 0 : index
    %c0_39 = arith.constant 0 : index
    %37 = vector.load %arg2[%c6_37, %c0_38, %c0_39] : memref<7x16x128xf32, #tpu.memory_space<vmem>>, vector<1x16x128xf32>
    %38 = vector.shape_cast %37 : vector<1x16x128xf32> to vector<16x128xf32>
    %cst_40 = arith.constant dense<0.000000e+00> : vector<256x128xf32>
    %39 = tpu.matmul %36, %38, %cst_40 {dimension_numbers = #tpu.dot_dimension_numbers<[1], [0], [0], [1], [0, 0, 1, 1], [], []>} : vector<256x16xf32>, vector<16x128xf32>, vector<256x128xf32> -> vector<256x128xf32>
    %40 = arith.addf %34, %39 : vector<256x128xf32>
    %c0_41 = arith.constant 0 : index
    %c0_42 = arith.constant 0 : index
    %41 = vector.load %arg3[%c0_41, %c0_42] : memref<1x128xf32, #tpu.memory_space<vmem>>, vector<1x128xf32>
    %42 = vector.broadcast %41 : vector<1x128xf32> to vector<256x128xf32>
    %43 = arith.addf %40, %42 : vector<256x128xf32>
    %cst_43 = arith.constant 0.000000e+00 : f32
    %44 = vector.broadcast %cst_43 : f32 to vector<256x128xf32>
    %45 = arith.maximumf %43, %44 : vector<256x128xf32>
    %46 = vector.shape_cast %45 : vector<256x128xf32> to vector<8x32x128xf32>
    %c0_44 = arith.constant 0 : index
    %c0_45 = arith.constant 0 : index
    %47 = vector.load %arg4[%c0_44, %c0_45] : memref<32x1xf32, #tpu.memory_space<vmem>>, vector<32x1xf32>
    %48 = vector.shape_cast %47 : vector<32x1xf32> to vector<1x32x1xf32>
    %49 = vector.broadcast %48 : vector<1x32x1xf32> to vector<8x32x128xf32>
    %50 = arith.mulf %46, %49 : vector<8x32x128xf32>
    %cst_46 = arith.constant dense<0.000000e+00> : vector<8x128xf32>
    %51 = vector.multi_reduction <add>, %50, %cst_46 [1] : vector<8x32x128xf32> to vector<8x128xf32>
    %c0_47 = arith.constant 0 : index
    %c0_48 = arith.constant 0 : index
    %52 = vector.load %arg5[%c0_47, %c0_48] : memref<128x128xf32, #tpu.memory_space<vmem>>, vector<128x128xf32>
    %cst_49 = arith.constant dense<0.000000e+00> : vector<8x128xf32>
    %53 = tpu.matmul %51, %52, %cst_49 {dimension_numbers = #tpu.dot_dimension_numbers<[1], [0], [0], [1], [0, 0, 1, 1], [], []>} : vector<8x128xf32>, vector<128x128xf32>, vector<8x128xf32> -> vector<8x128xf32>
    %c0_50 = arith.constant 0 : index
    %c0_51 = arith.constant 0 : index
    %54 = vector.load %arg6[%c0_50, %c0_51] : memref<1x128xf32, #tpu.memory_space<vmem>>, vector<1x128xf32>
    %55 = vector.broadcast %54 : vector<1x128xf32> to vector<8x128xf32>
    %56 = arith.addf %53, %55 : vector<8x128xf32>
    %c0_52 = arith.constant 0 : index
    %c0_53 = arith.constant 0 : index
    %57 = vector.load %arg7[%c0_52, %c0_53] : memref<8x128xf32, #tpu.memory_space<vmem>>, vector<8x128xf32>
    tpu.vector_store %arg7[%c0_52, %c0_53], %56 {strides = array<i32>} : memref<8x128xf32, #tpu.memory_space<vmem>>, vector<8x128xf32>,
    return
  }
  func.func @transform_0(%arg0: i32) -> (i32, i32, i32) {
    %c0_i32 = arith.constant 0 : i32
    %c0_i32_0 = arith.constant 0 : i32
    %c0_i32_1 = arith.constant 0 : i32
    return %arg0, %c0_i32, %c0_i32_0 : i32, i32, i32
  }
  func.func @transform_1(%arg0: i32) -> (i32, i32, i32) {
    %c0_i32 = arith.constant 0 : i32
    %c0_i32_0 = arith.constant 0 : i32
    %c0_i32_1 = arith.constant 0 : i32
    %c0_i32_2 = arith.constant 0 : i32
    return %c0_i32, %c0_i32_0, %c0_i32_1 : i32, i32, i32
  }
  func.func @transform_2(%arg0: i32) -> (i32, i32) {
    %c0_i32 = arith.constant 0 : i32
    %c0_i32_0 = arith.constant 0 : i32
    %c0_i32_1 = arith.constant 0 : i32
    return %c0_i32, %c0_i32_0 : i32, i32
  }
  func.func @transform_3(%arg0: i32) -> (i32, i32) {
    %c0_i32 = arith.constant 0 : i32
    %c0_i32_0 = arith.constant 0 : i32
    %c0_i32_1 = arith.constant 0 : i32
    return %c0_i32, %c0_i32_0 : i32, i32
  }
  func.func @transform_4(%arg0: i32) -> (i32, i32) {
    %c0_i32 = arith.constant 0 : i32
    %c0_i32_0 = arith.constant 0 : i32
    %c0_i32_1 = arith.constant 0 : i32
    return %c0_i32, %c0_i32_0 : i32, i32
  }
  func.func @transform_5(%arg0: i32) -> (i32, i32) {
    %c0_i32 = arith.constant 0 : i32
    %c0_i32_0 = arith.constant 0 : i32
    %c0_i32_1 = arith.constant 0 : i32
    return %c0_i32, %c0_i32_0 : i32, i32
  }
  func.func @transform_6(%arg0: i32) -> (i32, i32) {
    %c0_i32 = arith.constant 0 : i32
    %c0_i32_0 = arith.constant 0 : i32
    return %arg0, %c0_i32 : i32, i32
  }
}

</mosaic_0001>

<bundles_post_ra>
// kernel: tpu_custom_call.1
= control target key start
LH: loop header
LB: loop body
LE: loop exit
PB: predicated region body
PF: predicated region fallthrough
CT: control target
= control target key end

     0   :  { %11 = vsyncpa [#allocation3], 0  ;;  %s5372_s0 = inlined_call_operand.vmem [shape: f32[16,38,16], index: 0, kind: input, shape index: {}]   ;;  %s5373_s1 = inlined_call_operand.vmem [shape: f32[7,16,128], index: 1, kind: input, shape index: {}]   ;;  %s5374_s2 = inlined_call_operand.vmem [shape: f32[1,128], index: 2, kind: input, shape index: {}]   ;;  %s5375_s3 = inlined_call_operand.vmem [shape: f32[32,1], index: 3, kind: input, shape index: {}]   ;;  %s5376_s4 = inlined_call_operand.vmem [shape: f32[128,128], index: 4, kind: input, shape index: {}]   ;;  %s5377_s5 = inlined_call_operand.vmem [shape: f32[1,128], index: 5, kind: input, shape index: {}]   ;;  %s5378_s6 = inlined_call_operand.hbm [shape: f32[16,128], index: 6, kind: output, shape index: {}]  }
   0x1   :  { %13 = vsyncpa [#allocation3 + $0x1], 0  ;;  %s4349_s21 = smov 0   ;;  %s4351_s22 = smov 0  }
   0x2   :  { %s4353_s23 = smov 0   ;;  %s4355_s24 = smov 0  }
   0x3 LB: > { %s4370_s25 = sadd.s32 4294967295, %s4308_s24   ;;  %s3296_s26 = sadd.s32 4294967294, %s4308_s24   ;;  %s4308_s24 = sphi %s4355_s24, %s5384_s24   ;;  %s4304_s23 = sphi %s4353_s23, %s5383_s23   ;;  %s4300_s22 = sphi %s4351_s22, %s5382_s22   ;;  %s4296_s21 = sphi %s4349_s21, %s5381_s21  }
   0x4   : > { %s4374_s27 = sadd.s32 1, %s4308_s24   ;;  %s157_s28 = sadd.s32 1, %s4304_s23 }
   0x5   : > { %s154_s29 = ssub.s32 %s4308_s24, %s4374_s27  ;;  %p167_p0 = scmp.ne.s32.totalorder %s4304_s23, %s4300_s22 }
   0x6   : > { %p155_p1 = scmp.eq.s32.totalorder %s154_s29, 0  ;;  %p168_p2 = scmp.eq.s32.totalorder %s4370_s25, 1 }
   0x7   : > { %p173_p3 = scmp.ne.s32.totalorder %s4300_s22, %s4296_s21  ;;  %p174_p4 = scmp.eq.s32.totalorder %s3296_s26, 1 }
   0x8   : > { %s4385_s30 = scalar_select %p155_p1, %s4304_s23, %s157_s28  }
   0x9   : > { %p4387_p5 = por %p168_p2, %p167_p0  ;;  %p4391_p6 = por %p174_p4, %p173_p3 }
   0xa   : > { %p3299_p7 = scmp.ge.s32.totalorder %s4308_s24, 1  ;;  %p217_p8 = scmp.lt.s32.totalorder %s4308_s24, 3 }
   0xc   : > { %p218_p9 = pnand %p3299_p7, %p217_p8 }
   0xd   : > { %s3301_s13 = sshll.u32 (!%p218_p9), %s4370_s25, 3  ;;  %s245_s10 = sand.u32 (!%p218_p9), 1, %s4300_s22  }
   0xe   : > { %221 = sbr.rel (%p218_p9) target bundleno = 678 (0x2a6), region = 44  ;;  %p249_p10 = scmp.lt.s32.totalorder (!%p218_p9), %s3301_s13, 15 }
   0xf   : > { %s3300_s11 = sshll.u32 (!%p218_p9), %s245_s10, 3  ;;  %s3542_s14 = sshll.u32 (!%p218_p9), %s4370_s25, 7 }
  0x10   : > { %s247_s15 = scalar_lea.vmem (!%p218_p9), [#allocation2], %s3300_s11  ;;  %s5337_s19 = scalar_lea.hbm (!%p218_p9), %s5378_s6, %s3542_s14 }
  0x11   : > { %s3237_s16 = sshll.u32 (!%p218_p9), %s247_s15, 4  ;;  %s3224_s20 = scalar_lea.sflag (!%p218_p9), [#allocation3], %s245_s10  ;;  %s3238_s16 = int_to_ptr.vmem [resolvable:$true] %s3237_s16 }
  0x12   : > { %s4313_s28 = smov (!%p218_p9), [#allocation2]  }
  0x13   : > { %v3304_v0 = vld [vmem:[%s5373_s1 + $0x18] sm:$0xff]  ;;  %v3303_v1 = vld [vmem:[%s5373_s1 + $0x10] sm:$0xff]  ;;  %v3370_v2 = vld [vmem:[%s5373_s1 + $0x28] sm:$0xff]  ;;  %s5386_s13 = smov (!%p249_p10, %s3301_s13), 15  ;;  %vm324_vm0 = vcmask 130048   ;;  %vm4312_vm1 = vmmov 0  }
  0x14   : > { %3800 = vmatprep.subr.mxu0 %v3304_v0  ;;  %4199 = vmatprep.subr.mxu1 %v3304_v0  ;;  %v288_v3 = vld [vmem:[%s5373_s1 + $0x8] sm:$0xff]  ;;  %s4203_s18 = smul.u32 40, %s5386_s13  ;;  %v3369_v10 = vld [vmem:[%s5373_s1 + $0x20] sm:$0xff]  ;;  %v3404_v16 = vld [vmem:[%s5373_s1 + $0x38] sm:$0xff]  ;;  %vm3137_vm2 = vcmask 1041409   ;;  %vm3139_vm3 = vcmask 1042434  }
  0x15   : > { %3801 = vmatpush3.msra.mxu0 %v3304_v0  ;;  %4201 = vmatpush3.msra.mxu1 %v3304_v0  ;;  %v287_v11 = vld [vmem:[%s5373_s1] sm:$0xff]  ;;  %v4445_v17 = vld [vmem:[%s5373_s1 + $0x48] sm:$0xff]  ;;  %v3403_v42 = vld [vmem:[%s5373_s1 + $0x30] sm:$0xff]  ;;  %vm3141_vm4 = vcmask 1043459   ;;  %vm3143_vm5 = vcmask 1044484   ;;  %vm3145_vm6 = vcmask 1045509  }
  0x16   : > { %3802 = vmatprep.subr.mxu0 %v3303_v1  ;;  %4200 = vmatprep.subr.mxu1 %v3303_v1  ;;  %s4413_s26 = scalar_lea.vmem %s5372_s0, %s4203_s18  ;;  %v4510_v47 = vld [vmem:[%s5373_s1 + $0x58] sm:$0xff]  ;;  %v3437_v52 = vld [vmem:[%s5373_s1 + $0x40] sm:$0xff]  ;;  %v4534_v57 = vld [vmem:[%s5373_s1 + $0x68] sm:$0xff]  ;;  %vm3147_vm7 = vcmask 1046534   ;;  %vm3149_vm8 = vcmask 1047559   ;;  %s4252_s25 = sshll.u32 %s4313_s28, 4  ;;  %s4253_s25 = int_to_ptr.vmem [resolvable:$false] %s4252_s25 }
  0x17   : > { %3803 = vmatpush3.msra.mxu0 %v3303_v1  ;;  %4202 = vmatpush3.msra.mxu1 %v3303_v1  ;;  %v289_v4 = vld [vmem:[%s4413_s26 + $0x1] sm:$0xff]  ;;  %v307_v5 = vld [vmem:[%s4413_s26 + $0xb1] sm:$0xff]  ;;  %v290_v6 = vld [vmem:[%s4413_s26 + $0x9] sm:$0xff]  ;;  %s4254_s29 = scalar_lea.vmem %s4253_s25, 256  ;;  %p4255_p0 = scmp.lt.s32.totalorder %s3238_s16, %s4253_s25 }
  0x18   : > { %3904 = vmatprep.subr.mxu0 %v3370_v2  ;;  %3852 = vmatprep.subr.mxu1 %v288_v3  ;;  %v308_v7 = vld [vmem:[%s4413_s26 + $0xb9] sm:$0xff]  ;;  %v291_v8 = vld [vmem:[%s4413_s26 + $0x11] sm:$0xff]  ;;  %v309_v9 = vld [vmem:[%s4413_s26 + $0xc9] sm:$0xff] }
  0x19   : > { %3804 = vmatprep.mubr.msk.f32.mxu0 %vm324_vm0, %v289_v4  ;;  %3831 = vmatprep.mubr.msk.f32.mxu1 %vm324_vm0, %v307_v5  ;;  %v292_v12 = vld [vmem:[%s4413_s26 + $0x19] sm:$0xff]  ;;  %v310_v13 = vld [vmem:[%s4413_s26 + $0xd1] sm:$0xff]  ;;  %v293_v14 = vld [vmem:[%s4413_s26 + $0x29] sm:$0xff] }
  0x1a   : > { %3805 = vmatmul.mubr.msk.f32.vlgmr.msra.gmra.mxu0 %vm324_vm0, %v290_v6  ;;  %3832 = vmatmul.mubr.msk.f32.vlgmr.msra.gmra.mxu1 %vm324_vm0, %v308_v7  ;;  %v311_v15 = vld [vmem:[%s4413_s26 + $0xd9] sm:$0xff]  ;;  %v294_v18 = vld [vmem:[%s4413_s26 + $0x31] sm:$0xff]  ;;  %v312_v19 = vld [vmem:[%s4413_s26 + $0xe1] sm:$0xff] }
  0x1b   : > { %3905 = vmatpush3.msra.mxu0 %v3370_v2  ;;  %3807 = vmatprep.mubr.msk.f32.mxu0 %vm324_vm0, %v291_v8  ;;  %v295_v20 = vld [vmem:[%s4413_s26 + $0x39] sm:$0xff]  ;;  %v313_v21 = vld [vmem:[%s4413_s26 + $0xf1] sm:$0xff]  ;;  %v296_v22 = vld [vmem:[%s4413_s26 + $0x41] sm:$0xff] }
  0x1c   : > { %3834 = vmatprep.mubr.msk.f32.mxu1 %vm324_vm0, %v309_v9  ;;  %3853 = vmatpush3.msra.mxu1 %v288_v3  ;;  %v314_v23 = vld [vmem:[%s4413_s26 + $0xf9] sm:$0xff]  ;;  %v297_v24 = vld [vmem:[%s4413_s26 + $0x51] sm:$0xff]  ;;  %v315_v25 = vld [vmem:[%s4413_s26 + $0x101] sm:$0xff] }
  0x1d   : > { %3906 = vmatprep.subr.mxu0 %v3369_v10  ;;  %3854 = vmatprep.subr.mxu1 %v287_v11  ;;  %v298_v26 = vld [vmem:[%s4413_s26 + $0x59] sm:$0xff]  ;;  %v316_v27 = vld [vmem:[%s4413_s26 + $0x109] sm:$0xff]  ;;  %v299_v28 = vld [vmem:[%s4413_s26 + $0x61] sm:$0xff] }
  0x1e   : > { %3808 = vmatmul.mubr.msk.f32.gmra.mxu0 %vm324_vm0, %v292_v12  ;;  %3835 = vmatmul.mubr.msk.f32.gmra.mxu1 %vm324_vm0, %v310_v13  ;;  %v317_v29 = vld [vmem:[%s4413_s26 + $0x119] sm:$0xff]  ;;  %v300_v30 = vld [vmem:[%s4413_s26 + $0x69] sm:$0xff]  ;;  %v318_v31 = vld [vmem:[%s4413_s26 + $0x121] sm:$0xff] }
  0x1f   : > { %3810 = vmatprep.mubr.msk.f32.mxu0 %vm324_vm0, %v293_v14  ;;  %3837 = vmatprep.mubr.msk.f32.mxu1 %vm324_vm0, %v311_v15  ;;  %v301_v32 = vld [vmem:[%s4413_s26 + $0x79] sm:$0xff]  ;;  %v319_v33 = vld [vmem:[%s4413_s26 + $0x129] sm:$0xff]  ;;  %v302_v34 = vld [vmem:[%s4413_s26 + $0x81] sm:$0xff] }
  0x20   : > { %3907 = vmatpush3.msra.mxu0 %v3369_v10  ;;  %3855 = vmatpush3.msra.mxu1 %v287_v11  ;;  %v320_v35 = vld [vmem:[%s4413_s26 + $0x131] sm:$0xff]  ;;  %v303_v36 = vld [vmem:[%s4413_s26 + $0x89] sm:$0xff]  ;;  %v255_v37 = vld [vmem:[%s4413_s26] sm:$0xff] }
  0x21   : > { %3956 = vmatprep.subr.mxu1 %v3404_v16  ;;  %4008 = vmatprep.subr.mxu0 %v4445_v17  ;;  %v304_v38 = vld [vmem:[%s4413_s26 + $0x91] sm:$0xff]  ;;  %v256_v39 = vld [vmem:[%s4413_s26 + $0x8] sm:$0xff]  ;;  %v262_v53 = vld [vmem:[%s4413_s26 + $0x40] sm:$0xff] }
  0x22   : > { %3811 = vmatmul.mubr.msk.f32.gmra.mxu0 %vm324_vm0, %v294_v18  ;;  %3838 = vmatmul.mubr.msk.f32.gmra.mxu1 %vm324_vm0, %v312_v19  ;;  %v305_v40 = vld [vmem:[%s4413_s26 + $0xa1] sm:$0xff]  ;;  %v257_v41 = vld [vmem:[%s4413_s26 + $0x10] sm:$0xff]  ;;  %v258_v44 = vld [vmem:[%s4413_s26 + $0x18] sm:$0xff] }
  0x23   : > { %3813 = vmatprep.mubr.msk.f32.mxu0 %vm324_vm0, %v295_v20  ;;  %3840 = vmatprep.mubr.msk.f32.mxu1 %vm324_vm0, %v313_v21  ;;  %v306_v43 = vld [vmem:[%s4413_s26 + $0xa9] sm:$0xff]  ;;  %v261_v50 = vld [vmem:[%s4413_s26 + $0x38] sm:$0xff]  ;;  %v265_v60 = vld [vmem:[%s4413_s26 + $0x60] sm:$0xff] }
  0x24   : > { %v259_v45 = vld [vmem:[%s4413_s26 + $0x28] sm:$0xff]  ;;  %v260_v48 = vld [vmem:[%s4413_s26 + $0x30] sm:$0xff]  ;;  %v970_v54 = vld [vmem:[%s4413_s26 + $0x1a] sm:$0xff] }
  0x25   : > { %v967_v46 = vld [vmem:[%s4413_s26 + $0x2] sm:$0xff]  ;;  %v968_v49 = vld [vmem:[%s4413_s26 + $0xa] sm:$0xff]  ;;  %v969_v51 = vld [vmem:[%s4413_s26 + $0x12] sm:$0xff] }
  0x26   : > { %3814 = vmatmul.mubr.msk.f32.gmra.mxu0 %vm324_vm0, %v296_v22  ;;  %3841 = vmatmul.mubr.msk.f32.gmra.mxu1 %vm324_vm0, %v314_v23  ;;  %v263_v55 = vld [vmem:[%s4413_s26 + $0x50] sm:$0xff]  ;;  %v264_v58 = vld [vmem:[%s4413_s26 + $0x58] sm:$0xff]  ;;  %v266_v62 = vld [vmem:[%s4413_s26 + $0x68] sm:$0xff] }
  0x27   : > { %3816 = vmatprep.mubr.msk.f32.mxu0 %vm324_vm0, %v297_v24  ;;  %3843 = vmatprep.mubr.msk.f32.mxu1 %vm324_vm0, %v315_v25  ;;  %v971_v56 = vld [vmem:[%s4413_s26 + $0x2a] sm:$0xff]  ;;  %v972_v59 = vld [vmem:[%s4413_s26 + $0x32] sm:$0xff]  ;;  %v973_v61 = vld [vmem:[%s4413_s26 + $0x3a] sm:$0xff] }
  0x28   : > { %v974_v63 = vld [vmem:[%s4413_s26 + $0x42] sm:$0xff]  ;;  %v267_v0 = vld [vmem:[%s4413_s26 + $0x78] sm:$0xff]  ;;  %v270_v6 = vld [vmem:[%s4413_s26 + $0x90] sm:$0xff] }
  0x29   : > { %v975_v1 = vld [vmem:[%s4413_s26 + $0x52] sm:$0xff]  ;;  %v268_v2 = vld [vmem:[%s4413_s26 + $0x80] sm:$0xff]  ;;  %v269_v4 = vld [vmem:[%s4413_s26 + $0x88] sm:$0xff] }
  0x2a   : > { %3817 = vmatmul.mubr.msk.f32.gmra.mxu0 %vm324_vm0, %v298_v26  ;;  %3844 = vmatmul.mubr.msk.f32.gmra.mxu1 %vm324_vm0, %v316_v27  ;;  %v976_v3 = vld [vmem:[%s4413_s26 + $0x5a] sm:$0xff]  ;;  %v977_v5 = vld [vmem:[%s4413_s26 + $0x62] sm:$0xff]  ;;  %v978_v7 = vld [vmem:[%s4413_s26 + $0x6a] sm:$0xff] }
  0x2b   : > { %3819 = vmatprep.mubr.msk.f32.mxu0 %vm324_vm0, %v299_v28  ;;  %3846 = vmatprep.mubr.msk.f32.mxu1 %vm324_vm0, %v317_v29  ;;  %v271_v8 = vld [vmem:[%s4413_s26 + $0xa0] sm:$0xff]  ;;  %v272_v10 = vld [vmem:[%s4413_s26 + $0xa8] sm:$0xff]  ;;  %v273_v12 = vld [vmem:[%s4413_s26 + $0xb0] sm:$0xff] }
  0x2c   : > { %v979_v9 = vld [vmem:[%s4413_s26 + $0x7a] sm:$0xff]  ;;  %v980_v11 = vld [vmem:[%s4413_s26 + $0x82] sm:$0xff]  ;;  %v981_v13 = vld [vmem:[%s4413_s26 + $0x8a] sm:$0xff] }
  0x2d   : > { %v274_v14 = vld [vmem:[%s4413_s26 + $0xb8] sm:$0xff]  ;;  %v276_v18 = vld [vmem:[%s4413_s26 + $0xd0] sm:$0xff]  ;;  %v278_v22 = vld [vmem:[%s4413_s26 + $0xe0] sm:$0xff] }
  0x2e   : > { %3820 = vmatmul.mubr.msk.f32.gmra.mxu0 %vm324_vm0, %v300_v30  ;;  %3847 = vmatmul.mubr.msk.f32.gmra.mxu1 %vm324_vm0, %v318_v31  ;;  %v982_v15 = vld [vmem:[%s4413_s26 + $0x92] sm:$0xff]  ;;  %v984_v19 = vld [vmem:[%s4413_s26 + $0xaa] sm:$0xff]  ;;  %v986_v23 = vld [vmem:[%s4413_s26 + $0xba] sm:$0xff] }
  0x2f   : > { %3822 = vmatprep.mubr.msk.f32.mxu0 %vm324_vm0, %v301_v32  ;;  %3849 = vmatprep.mubr.msk.f32.mxu1 %vm324_vm0, %v319_v33  ;;  %v277_v20 = vld [vmem:[%s4413_s26 + $0xd8] sm:$0xff]  ;;  %v279_v24 = vld [vmem:[%s4413_s26 + $0xf0] sm:$0xff]  ;;  %v281_v28 = vld [vmem:[%s4413_s26 + $0x100] sm:$0xff] }
  0x30   : > { %v985_v21 = vld [vmem:[%s4413_s26 + $0xb2] sm:$0xff]  ;;  %v987_v25 = vld [vmem:[%s4413_s26 + $0xca] sm:$0xff]  ;;  %v989_v29 = vld [vmem:[%s4413_s26 + $0xda] sm:$0xff] }
  0x31   : > { %v280_v26 = vld [vmem:[%s4413_s26 + $0xf8] sm:$0xff]  ;;  %v282_v30 = vld [vmem:[%s4413_s26 + $0x108] sm:$0xff] }
  0x32   : > { %3823 = vmatmul.mubr.msk.f32.gmra.mxu0 %vm324_vm0, %v302_v34  ;;  %3850 = vmatmul.mubr.msk.f32.gmra.mxu1 %vm324_vm0, %v320_v35  ;;  %v988_v27 = vld [vmem:[%s4413_s26 + $0xd2] sm:$0xff]  ;;  %v990_v31 = vld [vmem:[%s4413_s26 + $0xe2] sm:$0xff]  ;;  %v992_v35 = vld [vmem:[%s4413_s26 + $0xfa] sm:$0xff] }
  0x33   : > { %3825 = vmatprep.mubr.msk.f32.mxu0 %vm324_vm0, %v303_v36  ;;  %3856 = vmatprep.mubr.msk.f32.mxu1 %vm324_vm0, %v255_v37  ;;  %v283_v32 = vld [vmem:[%s4413_s26 + $0x118] sm:$0xff]  ;;  %v284_v34 = vld [vmem:[%s4413_s26 + $0x120] sm:$0xff]  ;;  %v285_v36 = vld [vmem:[%s4413_s26 + $0x128] sm:$0xff] }
  0x34   : > { %v991_v33 = vld [vmem:[%s4413_s26 + $0xf2] sm:$0xff]  ;;  %v993_v37 = vld [vmem:[%s4413_s26 + $0x102] sm:$0xff] }
  0x36   : > { %3826 = vmatmul.mubr.msk.f32.gmra.mxu0 %vm324_vm0, %v304_v38  ;;  %3857 = vmatmul.mubr.msk.f32.vlgmr.msra.gmra.mxu1 %vm324_vm0, %v256_v39  ;;  %v286_v38 = vld [vmem:[%s4413_s26 + $0x130] sm:$0xff] }
  0x37   : > { %3828 = vmatprep.mubr.msk.f32.mxu0 %vm324_vm0, %v305_v40  ;;  %3859 = vmatprep.mubr.msk.f32.mxu1 %vm324_vm0, %v257_v41  ;;  %v994_v39 = vld [vmem:[%s4413_s26 + $0x10a] sm:$0xff]  ;;  %v995_v40 = vld [vmem:[%s4413_s26 + $0x11a] sm:$0xff] }
  0x38   : > { %3957 = vmatpush3.msra.mxu1 %v3404_v16  ;;  %v275_v16 = vld [vmem:[%s4413_s26 + $0xc8] sm:$0xff] }
  0x39   : > { %3958 = vmatprep.subr.mxu1 %v3403_v42  ;;  %v1355_v41 = vld [vmem:[%s4413_s26 + $0x3] sm:$0xff] }
  0x3a   : > { %3829 = vmatmul.mubr.msk.f32.gmra.mxu0 %vm324_vm0, %v306_v43  ;;  %3860 = vmatmul.mubr.msk.f32.gmra.mxu1 %vm324_vm0, %v258_v44  ;;  %v1356_v43 = vld [vmem:[%s4413_s26 + $0xb] sm:$0xff] }
  0x3b   : > { %3862 = vmatprep.mubr.msk.f32.mxu1 %vm324_vm0, %v259_v45  ;;  %3908 = vmatprep.mubr.msk.f32.mxu0 %vm324_vm0, %v967_v46  ;;  %v997_v44 = vld [vmem:[%s4413_s26 + $0x12a] sm:$0xff]  ;;  %v1357_v45 = vld [vmem:[%s4413_s26 + $0x13] sm:$0xff] }
  0x3c   : > { %3959 = vmatpush3.msra.mxu1 %v3403_v42  ;;  %v996_v42 = vld [vmem:[%s4413_s26 + $0x122] sm:$0xff]  ;;  %v3471_v46 = vld [vmem:[%s5373_s1 + $0x50] sm:$0xff] }
  0x3d   : > { %4060 = vmatprep.subr.mxu1 %v4510_v47 }
  0x3e   : > { %3863 = vmatmul.mubr.msk.f32.gmra.mxu1 %vm324_vm0, %v260_v48  ;;  %3909 = vmatmul.mubr.msk.f32.vlgmr.msra.gmra.mxu0 %vm324_vm0, %v968_v49  ;;  %v998_v48 = vld [vmem:[%s4413_s26 + $0x132] sm:$0xff]  ;;  %v1358_v49 = vld [vmem:[%s4413_s26 + $0x1b] sm:$0xff] }
  0x3f   : > { %4009 = vmatpush3.msra.mxu0 %v4445_v17  ;;  %3865 = vmatprep.mubr.msk.f32.mxu1 %vm324_vm0, %v261_v50  ;;  %v983_v17 = vld [vmem:[%s4413_s26 + $0xa2] sm:$0xff]  ;;  %v1359_v50 = vld [vmem:[%s4413_s26 + $0x2b] sm:$0xff] }
  0x40   : > { %3911 = vmatprep.mubr.msk.f32.mxu0 %vm324_vm0, %v969_v51  ;;  %4010 = vmatprep.subr.mxu0 %v3437_v52  ;;  %v1743_v51 = vld [vmem:[%s4413_s26 + $0x4] sm:$0xff] }
  0x41   : > { %4011 = vmatpush3.msra.mxu0 %v3437_v52  ;;  %v1360_v52 = vld [vmem:[%s4413_s26 + $0x33] sm:$0xff] }
  0x42   : > { %3866 = vmatmul.mubr.msk.f32.gmra.mxu1 %vm324_vm0, %v262_v53  ;;  %3912 = vmatmul.mubr.msk.f32.gmra.mxu0 %vm324_vm0, %v970_v54  ;;  %v1744_v53 = vld [vmem:[%s4413_s26 + $0xc] sm:$0xff]  ;;  %v1361_v54 = vld [vmem:[%s4413_s26 + $0x3b] sm:$0xff] }
  0x43   : > { %3868 = vmatprep.mubr.msk.f32.mxu1 %vm324_vm0, %v263_v55  ;;  %3914 = vmatprep.mubr.msk.f32.mxu0 %vm324_vm0, %v971_v56  ;;  %v3505_v55 = vld [vmem:[%s5373_s1 + $0x60] sm:$0xff] }
  0x44   : > { %4112 = vmatprep.subr.mxu0 %v4534_v57  ;;  %v1362_v56 = vld [vmem:[%s4413_s26 + $0x43] sm:$0xff] }
  0x46   : > { %3869 = vmatmul.mubr.msk.f32.gmra.mxu1 %vm324_vm0, %v264_v58  ;;  %3915 = vmatmul.mubr.msk.f32.gmra.mxu0 %vm324_vm0, %v972_v59  ;;  %v1746_v58 = vld [vmem:[%s4413_s26 + $0x1c] sm:$0xff]  ;;  %v1363_v59 = vld [vmem:[%s4413_s26 + $0x53] sm:$0xff] }
  0x47   : > { %3871 = vmatprep.mubr.msk.f32.mxu1 %vm324_vm0, %v265_v60  ;;  %3917 = vmatprep.mubr.msk.f32.mxu0 %vm324_vm0, %v973_v61  ;;  %v1747_v60 = vld [vmem:[%s4413_s26 + $0x2c] sm:$0xff]  ;;  %v1748_v61 = vld [vmem:[%s4413_s26 + $0x34] sm:$0xff] }
  0x4a   : > { %3872 = vmatmul.mubr.msk.f32.gmra.mxu1 %vm324_vm0, %v266_v62  ;;  %3918 = vmatmul.mubr.msk.f32.gmra.mxu0 %vm324_vm0, %v974_v63  ;;  %v1365_v62 = vld [vmem:[%s4413_s26 + $0x63] sm:$0xff] }
  0x4b   : > { %3874 = vmatprep.mubr.msk.f32.mxu1 %vm324_vm0, %v267_v0  ;;  %3920 = vmatprep.mubr.msk.f32.mxu0 %vm324_vm0, %v975_v1  ;;  %v1749_v63 = vld [vmem:[%s4413_s26 + $0x3c] sm:$0xff]  ;;  %v4310_v0 = vmov 0  }
  0x4c   : > { %4246 = vset.pattern.permute.xlu0 %v4310_v0  ;;  %v2978_v1 = vld [vmem:[%s5375_s3] sm:$0xff]  ;;  %4247 = vset.pattern.permute.xlu1 %v4310_v0  ;;  %v2523_v0 = vld [vmem:[%s4413_s26 + $0x2e] sm:$0xff] }
  0x4d   : > { %2984 = vperm.xlu0 %4246, %v2978_v1   ;;  %v2140_v1 = vld [vmem:[%s4413_s26 + $0x5d] sm:$0xff] }
  0x4e   : > { %3875 = vmatmul.mubr.msk.f32.gmra.mxu1 %vm324_vm0, %v268_v2  ;;  %3921 = vmatmul.mubr.msk.f32.gmra.mxu0 %vm324_vm0, %v976_v3  ;;  %v1366_v2 = vld [vmem:[%s4413_s26 + $0x6b] sm:$0xff] }
  0x4f   : > { %3877 = vmatprep.mubr.msk.f32.mxu1 %vm324_vm0, %v269_v4  ;;  %3923 = vmatprep.mubr.msk.f32.mxu0 %vm324_vm0, %v977_v5  ;;  %v1750_v3 = vld [vmem:[%s4413_s26 + $0x44] sm:$0xff]  ;;  %v1367_v4 = vld [vmem:[%s4413_s26 + $0x7b] sm:$0xff] }
  0x50   : > { %v1751_v5 = vld [vmem:[%s4413_s26 + $0x54] sm:$0xff] }
  0x52   : > { %3878 = vmatmul.mubr.msk.f32.gmra.mxu1 %vm324_vm0, %v270_v6  ;;  %3924 = vmatmul.mubr.msk.f32.gmra.mxu0 %vm324_vm0, %v978_v7  ;;  %v2980_v6 = vld [vmem:[%s5375_s3 + $0x10] sm:$0xff]  ;;  %v2979_v7 = vld [vmem:[%s5375_s3 + $0x8] sm:$0xff] }
  0x53   : > { %3880 = vmatprep.mubr.msk.f32.mxu1 %vm324_vm0, %v271_v8  ;;  %3926 = vmatprep.mubr.msk.f32.mxu0 %vm324_vm0, %v979_v9  ;;  %v1368_v8 = vld [vmem:[%s4413_s26 + $0x83] sm:$0xff] }
  0x54   : > { %2994 = vperm.xlu1 %4247, %v2980_v6   ;;  %2989 = vperm.xlu0 %4246, %v2979_v7   ;;  %v1752_v9 = vld [vmem:[%s4413_s26 + $0x5c] sm:$0xff]  ;;  %v2526_v6 = vld [vmem:[%s4413_s26 + $0x46] sm:$0xff] }
  0x55   : > { %v2143_v7 = vld [vmem:[%s4413_s26 + $0x7d] sm:$0xff] }
  0x56   : > { %3881 = vmatmul.mubr.msk.f32.gmra.mxu1 %vm324_vm0, %v272_v10  ;;  %3927 = vmatmul.mubr.msk.f32.gmra.mxu0 %vm324_vm0, %v980_v11  ;;  %v1369_v10 = vld [vmem:[%s4413_s26 + $0x8b] sm:$0xff] }
  0x57   : > { %3883 = vmatprep.mubr.msk.f32.mxu1 %vm324_vm0, %v273_v12  ;;  %3929 = vmatprep.mubr.msk.f32.mxu0 %vm324_vm0, %v981_v13  ;;  %v1753_v11 = vld [vmem:[%s4413_s26 + $0x64] sm:$0xff]  ;;  %v2981_v12 = vld [vmem:[%s5375_s3 + $0x18] sm:$0xff] }
  0x58   : > { %2999 = vperm.xlu1 %4247, %v2981_v12   ;;  %v1370_v13 = vld [vmem:[%s4413_s26 + $0x93] sm:$0xff]  ;;  %v2529_v12 = vld [vmem:[%s4413_s26 + $0x66] sm:$0xff] }
  0x5a   : > { %3884 = vmatmul.mubr.msk.f32.gmra.mxu1 %vm324_vm0, %v274_v14  ;;  %3930 = vmatmul.mubr.msk.f32.gmra.mxu0 %vm324_vm0, %v982_v15  ;;  %v1754_v14 = vld [vmem:[%s4413_s26 + $0x6c] sm:$0xff]  ;;  %v1371_v15 = vld [vmem:[%s4413_s26 + $0xa3] sm:$0xff] }
  0x5b   : > { %3886 = vmatprep.mubr.msk.f32.mxu1 %vm324_vm0, %v275_v16  ;;  %3932 = vmatprep.mubr.msk.f32.mxu0 %vm324_vm0, %v983_v17  ;;  %v1755_v16 = vld [vmem:[%s4413_s26 + $0x7c] sm:$0xff]  ;;  %v1372_v17 = vld [vmem:[%s4413_s26 + $0xab] sm:$0xff] }
  0x5e   : > { %3887 = vmatmul.mubr.msk.f32.gmra.mxu1 %vm324_vm0, %v276_v18  ;;  %3933 = vmatmul.mubr.msk.f32.gmra.mxu0 %vm324_vm0, %v984_v19  ;;  %v1756_v18 = vld [vmem:[%s4413_s26 + $0x84] sm:$0xff]  ;;  %v1373_v19 = vld [vmem:[%s4413_s26 + $0xb3] sm:$0xff] }
  0x5f   : > { %3889 = vmatprep.mubr.msk.f32.mxu1 %vm324_vm0, %v277_v20  ;;  %3935 = vmatprep.mubr.msk.f32.mxu0 %vm324_vm0, %v985_v21  ;;  %v1757_v20 = vld [vmem:[%s4413_s26 + $0x8c] sm:$0xff]  ;;  %v1374_v21 = vld [vmem:[%s4413_s26 + $0xbb] sm:$0xff] }
  0x62   : > { %3890 = vmatmul.mubr.msk.f32.gmra.mxu1 %vm324_vm0, %v278_v22  ;;  %3936 = vmatmul.mubr.msk.f32.gmra.mxu0 %vm324_vm0, %v986_v23  ;;  %v1758_v22 = vld [vmem:[%s4413_s26 + $0x94] sm:$0xff]  ;;  %v1375_v23 = vld [vmem:[%s4413_s26 + $0xcb] sm:$0xff] }
  0x63   : > { %3892 = vmatprep.mubr.msk.f32.mxu1 %vm324_vm0, %v279_v24  ;;  %3938 = vmatprep.mubr.msk.f32.mxu0 %vm324_vm0, %v987_v25  ;;  %v1759_v24 = vld [vmem:[%s4413_s26 + $0xa4] sm:$0xff]  ;;  %v1376_v25 = vld [vmem:[%s4413_s26 + $0xd3] sm:$0xff] }
  0x66   : > { %3893 = vmatmul.mubr.msk.f32.gmra.mxu1 %vm324_vm0, %v280_v26  ;;  %3939 = vmatmul.mubr.msk.f32.gmra.mxu0 %vm324_vm0, %v988_v27  ;;  %v1760_v26 = vld [vmem:[%s4413_s26 + $0xac] sm:$0xff]  ;;  %v1377_v27 = vld [vmem:[%s4413_s26 + $0xdb] sm:$0xff] }
  0x67   : > { %3895 = vmatprep.mubr.msk.f32.mxu1 %vm324_vm0, %v281_v28  ;;  %3941 = vmatprep.mubr.msk.f32.mxu0 %vm324_vm0, %v989_v29  ;;  %v1761_v28 = vld [vmem:[%s4413_s26 + $0xb4] sm:$0xff]  ;;  %v1378_v29 = vld [vmem:[%s4413_s26 + $0xe3] sm:$0xff] }
  0x6a   : > { %3896 = vmatmul.mubr.msk.f32.gmra.mxu1 %vm324_vm0, %v282_v30  ;;  %3942 = vmatmul.mubr.msk.f32.gmra.mxu0 %vm324_vm0, %v990_v31  ;;  %v1762_v30 = vld [vmem:[%s4413_s26 + $0xbc] sm:$0xff]  ;;  %v1379_v31 = vld [vmem:[%s4413_s26 + $0xf3] sm:$0xff] }
  0x6b   : > { %3898 = vmatprep.mubr.msk.f32.mxu1 %vm324_vm0, %v283_v32  ;;  %3944 = vmatprep.mubr.msk.f32.mxu0 %vm324_vm0, %v991_v33  ;;  %v1763_v32 = vld [vmem:[%s4413_s26 + $0xcc] sm:$0xff]  ;;  %v1380_v33 = vld [vmem:[%s4413_s26 + $0xfb] sm:$0xff] }
  0x6e   : > { %3899 = vmatmul.mubr.msk.f32.gmra.mxu1 %vm324_vm0, %v284_v34  ;;  %3945 = vmatmul.mubr.msk.f32.gmra.mxu0 %vm324_vm0, %v992_v35  ;;  %v1764_v34 = vld [vmem:[%s4413_s26 + $0xd4] sm:$0xff]  ;;  %v1381_v35 = vld [vmem:[%s4413_s26 + $0x103] sm:$0xff] }
  0x6f   : > { %3901 = vmatprep.mubr.msk.f32.mxu1 %vm324_vm0, %v285_v36  ;;  %3947 = vmatprep.mubr.msk.f32.mxu0 %vm324_vm0, %v993_v37  ;;  %v1765_v36 = vld [vmem:[%s4413_s26 + $0xdc] sm:$0xff]  ;;  %v1382_v37 = vld [vmem:[%s4413_s26 + $0x10b] sm:$0xff] }
  0x72   : > { %3902 = vmatmul.mubr.msk.f32.gmra.mxu1 %vm324_vm0, %v286_v38  ;;  %3948 = vmatmul.mubr.msk.f32.gmra.mxu0 %vm324_vm0, %v994_v39  ;;  %v1766_v38 = vld [vmem:[%s4413_s26 + $0xe4] sm:$0xff]  ;;  %v1383_v39 = vld [vmem:[%s4413_s26 + $0x11b] sm:$0xff] }
  0x73   : > { %3950 = vmatprep.mubr.msk.f32.mxu0 %vm324_vm0, %v995_v40  ;;  %3960 = vmatprep.mubr.msk.f32.mxu1 %vm324_vm0, %v1355_v41  ;;  %v1767_v40 = vld [vmem:[%s4413_s26 + $0xf4] sm:$0xff]  ;;  %v1384_v41 = vld [vmem:[%s4413_s26 + $0x123] sm:$0xff] }
  0x76   : > { %3951 = vmatmul.mubr.msk.f32.gmra.mxu0 %vm324_vm0, %v996_v42  ;;  %3961 = vmatmul.mubr.msk.f32.vlgmr.msra.gmra.mxu1 %vm324_vm0, %v1356_v43  ;;  %v1768_v42 = vld [vmem:[%s4413_s26 + $0xfc] sm:$0xff]  ;;  %v1385_v43 = vld [vmem:[%s4413_s26 + $0x12b] sm:$0xff] }
  0x77   : > { %3953 = vmatprep.mubr.msk.f32.mxu0 %vm324_vm0, %v997_v44  ;;  %3963 = vmatprep.mubr.msk.f32.mxu1 %vm324_vm0, %v1357_v45  ;;  %v1769_v44 = vld [vmem:[%s4413_s26 + $0x104] sm:$0xff]  ;;  %v1386_v45 = vld [vmem:[%s4413_s26 + $0x133] sm:$0xff] }
  0x78   : > { %4061 = vmatpush3.msra.mxu1 %v4510_v47  ;;  %v1745_v47 = vld [vmem:[%s4413_s26 + $0x14] sm:$0xff] }
  0x79   : > { %4062 = vmatprep.subr.mxu1 %v3471_v46 }
  0x7a   : > { %3954 = vmatmul.mubr.msk.f32.gmra.mxu0 %vm324_vm0, %v998_v48  ;;  %3964 = vmatmul.mubr.msk.f32.gmra.mxu1 %vm324_vm0, %v1358_v49  ;;  %v1771_v48 = vld [vmem:[%s4413_s26 + $0x11c] sm:$0xff]  ;;  %v2131_v49 = vld [vmem:[%s4413_s26 + $0x5] sm:$0xff] }
  0x7b   : > { %3966 = vmatprep.mubr.msk.f32.mxu1 %vm324_vm0, %v1359_v50  ;;  %4012 = vmatprep.mubr.msk.f32.mxu0 %vm324_vm0, %v1743_v51  ;;  %v1772_v50 = vld [vmem:[%s4413_s26 + $0x124] sm:$0xff]  ;;  %v2132_v51 = vld [vmem:[%s4413_s26 + $0xd] sm:$0xff] }
  0x7c   : > { %4063 = vmatpush3.msra.mxu1 %v3471_v46  ;;  %v1770_v46 = vld [vmem:[%s4413_s26 + $0x10c] sm:$0xff] }
  0x7e   : > { %3967 = vmatmul.mubr.msk.f32.gmra.mxu1 %vm324_vm0, %v1360_v52  ;;  %4013 = vmatmul.mubr.msk.f32.vlgmr.msra.gmra.mxu0 %vm324_vm0, %v1744_v53  ;;  %v1773_v52 = vld [vmem:[%s4413_s26 + $0x12c] sm:$0xff]  ;;  %v2133_v53 = vld [vmem:[%s4413_s26 + $0x15] sm:$0xff] }
  0x7f   : > { %4113 = vmatpush3.msra.mxu0 %v4534_v57  ;;  %3969 = vmatprep.mubr.msk.f32.mxu1 %vm324_vm0, %v1361_v54  ;;  %v1364_v57 = vld [vmem:[%s4413_s26 + $0x5b] sm:$0xff] }
  0x80   : > { %4015 = vmatprep.mubr.msk.f32.mxu0 %vm324_vm0, %v1745_v47  ;;  %4114 = vmatprep.subr.mxu0 %v3505_v55  ;;  %v1774_v54 = vld [vmem:[%s4413_s26 + $0x134] sm:$0xff]  ;;  %v2134_v47 = vld [vmem:[%s4413_s26 + $0x1d] sm:$0xff] }
  0x81   : > { %4115 = vmatpush3.msra.mxu0 %v3505_v55  ;;  %v2135_v55 = vld [vmem:[%s4413_s26 + $0x2d] sm:$0xff] }
  0x82   : > { %3970 = vmatmul.mubr.msk.f32.gmra.mxu1 %vm324_vm0, %v1362_v56  ;;  %4016 = vmatmul.mubr.msk.f32.gmra.mxu0 %vm324_vm0, %v1746_v58  ;;  %v2519_v56 = vld [vmem:[%s4413_s26 + $0x6] sm:$0xff]  ;;  %v2136_v58 = vld [vmem:[%s4413_s26 + $0x35] sm:$0xff] }
  0x83   : > { %3972 = vmatprep.mubr.msk.f32.mxu1 %vm324_vm0, %v1363_v59  ;;  %4018 = vmatprep.mubr.msk.f32.mxu0 %vm324_vm0, %v1747_v60  ;;  %v2520_v59 = vld [vmem:[%s4413_s26 + $0xe] sm:$0xff]  ;;  %v2137_v60 = vld [vmem:[%s4413_s26 + $0x3d] sm:$0xff] }
  0x86   : > { %3973 = vmatmul.mubr.msk.f32.gmra.mxu1 %vm324_vm0, %v1364_v57  ;;  %4019 = vmatmul.mubr.msk.f32.gmra.mxu0 %vm324_vm0, %v1748_v61  ;;  %v2521_v57 = vld [vmem:[%s4413_s26 + $0x16] sm:$0xff]  ;;  %v2138_v61 = vld [vmem:[%s4413_s26 + $0x45] sm:$0xff] }
  0x87   : > { %3975 = vmatprep.mubr.msk.f32.mxu1 %vm324_vm0, %v1365_v62  ;;  %4021 = vmatprep.mubr.msk.f32.mxu0 %vm324_vm0, %v1749_v63  ;;  %v2522_v62 = vld [vmem:[%s4413_s26 + $0x1e] sm:$0xff]  ;;  %v2139_v63 = vld [vmem:[%s4413_s26 + $0x55] sm:$0xff] }
  0x8a   : > { %3976 = vmatmul.mubr.msk.f32.gmra.mxu1 %vm324_vm0, %v1366_v2  ;;  %4022 = vmatmul.mubr.msk.f32.gmra.mxu0 %vm324_vm0, %v1750_v3  ;;  %v2524_v2 = vld [vmem:[%s4413_s26 + $0x36] sm:$0xff]  ;;  %v2141_v3 = vld [vmem:[%s4413_s26 + $0x65] sm:$0xff] }
  0x8b   : > { %3978 = vmatprep.mubr.msk.f32.mxu1 %vm324_vm0, %v1367_v4  ;;  %4024 = vmatprep.mubr.msk.f32.mxu0 %vm324_vm0, %v1751_v5  ;;  %v2525_v4 = vld [vmem:[%s4413_s26 + $0x3e] sm:$0xff]  ;;  %v2142_v5 = vld [vmem:[%s4413_s26 + $0x6d] sm:$0xff] }
  0x8e   : > { %3979 = vmatmul.mubr.msk.f32.gmra.mxu1 %vm324_vm0, %v1368_v8  ;;  %4025 = vmatmul.mubr.msk.f32.gmra.mxu0 %vm324_vm0, %v1752_v9  ;;  %v2527_v8 = vld [vmem:[%s4413_s26 + $0x56] sm:$0xff]  ;;  %v2144_v9 = vld [vmem:[%s4413_s26 + $0x85] sm:$0xff] }
  0x8f   : > { %3981 = vmatprep.mubr.msk.f32.mxu1 %vm324_vm0, %v1369_v10  ;;  %4027 = vmatprep.mubr.msk.f32.mxu0 %vm324_vm0, %v1753_v11  ;;  %v2528_v10 = vld [vmem:[%s4413_s26 + $0x5e] sm:$0xff]  ;;  %v2145_v11 = vld [vmem:[%s4413_s26 + $0x8d] sm:$0xff] }
  0x92   : > { %3982 = vmatmul.mubr.msk.f32.gmra.mxu1 %vm324_vm0, %v1370_v13  ;;  %4028 = vmatmul.mubr.msk.f32.gmra.mxu0 %vm324_vm0, %v1754_v14  ;;  %v2146_v13 = vld [vmem:[%s4413_s26 + $0x95] sm:$0xff] }
  0x93   : > { %3984 = vmatprep.mubr.msk.f32.mxu1 %vm324_vm0, %v1371_v15  ;;  %4030 = vmatprep.mubr.msk.f32.mxu0 %vm324_vm0, %v1755_v16  ;;  %v2530_v14 = vld [vmem:[%s4413_s26 + $0x6e] sm:$0xff]  ;;  %v2147_v15 = vld [vmem:[%s4413_s26 + $0xa5] sm:$0xff] }
  0x94   : > { %v2531_v16 = vld [vmem:[%s4413_s26 + $0x7e] sm:$0xff] }
  0x96   : > { %3985 = vmatmul.mubr.msk.f32.gmra.mxu1 %vm324_vm0, %v1372_v17  ;;  %4031 = vmatmul.mubr.msk.f32.gmra.mxu0 %vm324_vm0, %v1756_v18  ;;  %v2148_v17 = vld [vmem:[%s4413_s26 + $0xad] sm:$0xff] }
  0x97   : > { %3987 = vmatprep.mubr.msk.f32.mxu1 %vm324_vm0, %v1373_v19  ;;  %4033 = vmatprep.mubr.msk.f32.mxu0 %vm324_vm0, %v1757_v20  ;;  %v2532_v18 = vld [vmem:[%s4413_s26 + $0x86] sm:$0xff]  ;;  %v2149_v19 = vld [vmem:[%s4413_s26 + $0xb5] sm:$0xff] }
  0x98   : > { %v2533_v20 = vld [vmem:[%s4413_s26 + $0x8e] sm:$0xff] }
  0x9a   : > { %3988 = vmatmul.mubr.msk.f32.gmra.mxu1 %vm324_vm0, %v1374_v21  ;;  %4034 = vmatmul.mubr.msk.f32.gmra.mxu0 %vm324_vm0, %v1758_v22  ;;  %v2150_v21 = vld [vmem:[%s4413_s26 + $0xbd] sm:$0xff] }
  0x9b   : > { %3990 = vmatprep.mubr.msk.f32.mxu1 %vm324_vm0, %v1375_v23  ;;  %4036 = vmatprep.mubr.msk.f32.mxu0 %vm324_vm0, %v1759_v24  ;;  %v2534_v22 = vld [vmem:[%s4413_s26 + $0x96] sm:$0xff]  ;;  %v2151_v23 = vld [vmem:[%s4413_s26 + $0xcd] sm:$0xff] }
  0x9c   : > { %v2535_v24 = vld [vmem:[%s4413_s26 + $0xa6] sm:$0xff] }
  0x9e   : > { %3991 = vmatmul.mubr.msk.f32.gmra.mxu1 %vm324_vm0, %v1376_v25  ;;  %4037 = vmatmul.mubr.msk.f32.gmra.mxu0 %vm324_vm0, %v1760_v26 }
  0x9f   : > { %3993 = vmatprep.mubr.msk.f32.mxu1 %vm324_vm0, %v1377_v27  ;;  %4039 = vmatprep.mubr.msk.f32.mxu0 %vm324_vm0, %v1761_v28  ;;  %v2152_v27 = vld [vmem:[%s4413_s26 + $0xd5] sm:$0xff] }
  0xa0   : > { %v2536_v28 = vld [vmem:[%s4413_s26 + $0xae] sm:$0xff] }
  0xa2   : > { %3994 = vmatmul.mubr.msk.f32.gmra.mxu1 %vm324_vm0, %v1378_v29  ;;  %4040 = vmatmul.mubr.msk.f32.gmra.mxu0 %vm324_vm0, %v1762_v30 }
  0xa3   : > { %3996 = vmatprep.mubr.msk.f32.mxu1 %vm324_vm0, %v1379_v31  ;;  %4042 = vmatprep.mubr.msk.f32.mxu0 %vm324_vm0, %v1763_v32  ;;  %v2153_v31 = vld [vmem:[%s4413_s26 + $0xdd] sm:$0xff] }
  0xa4   : > { %v2537_v32 = vld [vmem:[%s4413_s26 + $0xb6] sm:$0xff] }
  0xa6   : > { %3997 = vmatmul.mubr.msk.f32.gmra.mxu1 %vm324_vm0, %v1380_v33  ;;  %4043 = vmatmul.mubr.msk.f32.gmra.mxu0 %vm324_vm0, %v1764_v34 }
  0xa7   : > { %3999 = vmatprep.mubr.msk.f32.mxu1 %vm324_vm0, %v1381_v35  ;;  %4045 = vmatprep.mubr.msk.f32.mxu0 %vm324_vm0, %v1765_v36  ;;  %v2154_v35 = vld [vmem:[%s4413_s26 + $0xe5] sm:$0xff] }
  0xa8   : > { %v2538_v36 = vld [vmem:[%s4413_s26 + $0xbe] sm:$0xff] }
  0xaa   : > { %4000 = vmatmul.mubr.msk.f32.gmra.mxu1 %vm324_vm0, %v1382_v37  ;;  %4046 = vmatmul.mubr.msk.f32.gmra.mxu0 %vm324_vm0, %v1766_v38 }
  0xab   : > { %4002 = vmatprep.mubr.msk.f32.mxu1 %vm324_vm0, %v1383_v39  ;;  %4048 = vmatprep.mubr.msk.f32.mxu0 %vm324_vm0, %v1767_v40  ;;  %v2155_v39 = vld [vmem:[%s4413_s26 + $0xf5] sm:$0xff] }
  0xac   : > { %v2539_v40 = vld [vmem:[%s4413_s26 + $0xce] sm:$0xff] }
  0xae   : > { %4003 = vmatmul.mubr.msk.f32.gmra.mxu1 %vm324_vm0, %v1384_v41  ;;  %4049 = vmatmul.mubr.msk.f32.gmra.mxu0 %vm324_vm0, %v1768_v42 }
  0xaf   : > { %4005 = vmatprep.mubr.msk.f32.mxu1 %vm324_vm0, %v1385_v43  ;;  %4051 = vmatprep.mubr.msk.f32.mxu0 %vm324_vm0, %v1769_v44  ;;  %v2156_v43 = vld [vmem:[%s4413_s26 + $0xfd] sm:$0xff] }
  0xb0   : > { %v2540_v44 = vld [vmem:[%s4413_s26 + $0xd6] sm:$0xff] }
  0xb2   : > { %4006 = vmatmul.mubr.msk.f32.gmra.mxu1 %vm324_vm0, %v1386_v45  ;;  %4052 = vmatmul.mubr.msk.f32.gmra.mxu0 %vm324_vm0, %v1770_v46 }
  0xb3   : > { %4054 = vmatprep.mubr.msk.f32.mxu0 %vm324_vm0, %v1771_v48  ;;  %4064 = vmatprep.mubr.msk.f32.mxu1 %vm324_vm0, %v2131_v49  ;;  %v2157_v48 = vld [vmem:[%s4413_s26 + $0x105] sm:$0xff] }
  0xb4   : > { %v2541_v49 = vld [vmem:[%s4413_s26 + $0xde] sm:$0xff] }
  0xb6   : > { %4055 = vmatmul.mubr.msk.f32.gmra.mxu0 %vm324_vm0, %v1772_v50  ;;  %4065 = vmatmul.mubr.msk.f32.vlgmr.msra.gmra.mxu1 %vm324_vm0, %v2132_v51 }
  0xb7   : > { %4057 = vmatprep.mubr.msk.f32.mxu0 %vm324_vm0, %v1773_v52  ;;  %4067 = vmatprep.mubr.msk.f32.mxu1 %vm324_vm0, %v2133_v53  ;;  %v2158_v52 = vld [vmem:[%s4413_s26 + $0x10d] sm:$0xff] }
  0xb8   : > { %v2542_v53 = vld [vmem:[%s4413_s26 + $0xe6] sm:$0xff] }
  0xba   : > { %4058 = vmatmul.mubr.msk.f32.gmra.mxu0 %vm324_vm0, %v1774_v54  ;;  %4068 = vmatmul.mubr.msk.f32.gmra.mxu1 %vm324_vm0, %v2134_v47 }
  0xbb   : > { %4070 = vmatprep.mubr.msk.f32.mxu1 %vm324_vm0, %v2135_v55  ;;  %4116 = vmatprep.mubr.msk.f32.mxu0 %vm324_vm0, %v2519_v56  ;;  %v2159_v55 = vld [vmem:[%s4413_s26 + $0x11d] sm:$0xff] }
  0xbc   : > { %v2543_v56 = vld [vmem:[%s4413_s26 + $0xf6] sm:$0xff] }
  0xbe   : > { %4071 = vmatmul.mubr.msk.f32.gmra.mxu1 %vm324_vm0, %v2136_v58  ;;  %4117 = vmatmul.mubr.msk.f32.vlgmr.msra.gmra.mxu0 %vm324_vm0, %v2520_v59 }
  0xbf   : > { %4073 = vmatprep.mubr.msk.f32.mxu1 %vm324_vm0, %v2137_v60  ;;  %4119 = vmatprep.mubr.msk.f32.mxu0 %vm324_vm0, %v2521_v57  ;;  %v2160_v60 = vld [vmem:[%s4413_s26 + $0x125] sm:$0xff] }
  0xc0   : > { %v2544_v57 = vld [vmem:[%s4413_s26 + $0xfe] sm:$0xff] }
  0xc2   : > { %4074 = vmatmul.mubr.msk.f32.gmra.mxu1 %vm324_vm0, %v2138_v61  ;;  %4120 = vmatmul.mubr.msk.f32.gmra.mxu0 %vm324_vm0, %v2522_v62 }
  0xc3   : > { %4076 = vmatprep.mubr.msk.f32.mxu1 %vm324_vm0, %v2139_v63  ;;  %4122 = vmatprep.mubr.msk.f32.mxu0 %vm324_vm0, %v2523_v0  ;;  %v2161_v63 = vld [vmem:[%s4413_s26 + $0x12d] sm:$0xff] }
  0xc4   : > { %v2545_v0 = vld [vmem:[%s4413_s26 + $0x106] sm:$0xff] }
  0xc6   : > { %4077 = vmatmul.mubr.msk.f32.gmra.mxu1 %vm324_vm0, %v2140_v1  ;;  %4123 = vmatmul.mubr.msk.f32.gmra.mxu0 %vm324_vm0, %v2524_v2 }
  0xc7   : > { %4079 = vmatprep.mubr.msk.f32.mxu1 %vm324_vm0, %v2141_v3  ;;  %4125 = vmatprep.mubr.msk.f32.mxu0 %vm324_vm0, %v2525_v4  ;;  %v2162_v3 = vld [vmem:[%s4413_s26 + $0x135] sm:$0xff] }
  0xc8   : > { %v2546_v4 = vld [vmem:[%s4413_s26 + $0x10e] sm:$0xff] }
  0xca   : > { %4080 = vmatmul.mubr.msk.f32.gmra.mxu1 %vm324_vm0, %v2142_v5  ;;  %4126 = vmatmul.mubr.msk.f32.gmra.mxu0 %vm324_vm0, %v2526_v6 }
  0xcb   : > { %4082 = vmatprep.mubr.msk.f32.mxu1 %vm324_vm0, %v2143_v7  ;;  %4128 = vmatprep.mubr.msk.f32.mxu0 %vm324_vm0, %v2527_v8  ;;  %v2547_v7 = vld [vmem:[%s4413_s26 + $0x11e] sm:$0xff] }
  0xce   : > { %4083 = vmatmul.mubr.msk.f32.gmra.mxu1 %vm324_vm0, %v2144_v9  ;;  %4129 = vmatmul.mubr.msk.f32.gmra.mxu0 %vm324_vm0, %v2528_v10  ;;  %v2548_v10 = vld [vmem:[%s4413_s26 + $0x126] sm:$0xff] }
  0xcf   : > { %4085 = vmatprep.mubr.msk.f32.mxu1 %vm324_vm0, %v2145_v11  ;;  %4131 = vmatprep.mubr.msk.f32.mxu0 %vm324_vm0, %v2529_v12 }
  0xd2   : > { %4086 = vmatmul.mubr.msk.f32.gmra.mxu1 %vm324_vm0, %v2146_v13  ;;  %4132 = vmatmul.mubr.msk.f32.gmra.mxu0 %vm324_vm0, %v2530_v14  ;;  %v2549_v13 = vld [vmem:[%s4413_s26 + $0x12e] sm:$0xff] }
  0xd3   : > { %4088 = vmatprep.mubr.msk.f32.mxu1 %vm324_vm0, %v2147_v15  ;;  %4134 = vmatprep.mubr.msk.f32.mxu0 %vm324_vm0, %v2531_v16 }
  0xd6   : > { %4089 = vmatmul.mubr.msk.f32.gmra.mxu1 %vm324_vm0, %v2148_v17  ;;  %4135 = vmatmul.mubr.msk.f32.gmra.mxu0 %vm324_vm0, %v2532_v18  ;;  %v2550_v17 = vld [vmem:[%s4413_s26 + $0x136] sm:$0xff]  ;;  %s4248_s26 = scalar_lea.vmem %s3238_s16, 128 }
  0xd7   : > { %4091 = vmatprep.mubr.msk.f32.mxu1 %vm324_vm0, %v2149_v19  ;;  %4137 = vmatprep.mubr.msk.f32.mxu0 %vm324_vm0, %v2533_v20  ;;  %p4249_p11 = scmp.ne.s32.totalorder %s3238_s16, %s4248_s26  ;;  %p4256_p1 = scmp.lt.s32.totalorder %s4254_s29, %s4248_s26 }
  0xd9   : > { %p4250_p12 = pnand %p4249_p11, %p4387_p5  ;;  %p4257_p2 = por %p4256_p1, %p4255_p0 }
  0xda   : > { %v4861_v25 = vpop.f32.mrf.mxu0  ;;  %v4863_v26 = vpop.f32.mrf.mxu1  ;;  %4092 = vmatmul.mubr.msk.f32.gmra.mxu1 %vm324_vm0, %v2150_v21  ;;  %4138 = vmatmul.mubr.msk.f32.gmra.mxu0 %vm324_vm0, %v2534_v22 }
  0xdb   : > { %4094 = vmatprep.mubr.msk.f32.mxu1 %vm324_vm0, %v2151_v23  ;;  %4140 = vmatprep.mubr.msk.f32.mxu0 %vm324_vm0, %v2535_v24  ;;  %p4251_p13 = pneg %p4250_p12 }
  0xdc   : > { %v4871_v29 = vpop.f32.mrf.mxu0  ;;  %v4873_v30 = vpop.f32.mrf.mxu1 }
  0xdd   : > { %p4258_p3 = pnand %p4257_p2, %p4251_p13 }
  0xde   : > { %v4877_v33 = vpop.f32.mrf.mxu0  ;;  %v4879_v34 = vpop.f32.mrf.mxu1  ;;  %4095 = vmatmul.mubr.msk.f32.gmra.mxu1 %vm324_vm0, %v2152_v27  ;;  %4141 = vmatmul.mubr.msk.f32.gmra.mxu0 %vm324_vm0, %v2536_v28 }
  0xdf   : > { %4097 = vmatprep.mubr.msk.f32.mxu1 %vm324_vm0, %v2153_v31  ;;  %4143 = vmatprep.mubr.msk.f32.mxu0 %vm324_vm0, %v2537_v32 }
  0xe0   : > { %v4887_v37 = vpop.f32.mrf.mxu0  ;;  %v4889_v38 = vpop.f32.mrf.mxu1 }
  0xe2   : > { %v4893_v41 = vpop.f32.mrf.mxu0  ;;  %v4895_v42 = vpop.f32.mrf.mxu1  ;;  %4098 = vmatmul.mubr.msk.f32.gmra.mxu1 %vm324_vm0, %v2154_v35  ;;  %4144 = vmatmul.mubr.msk.f32.gmra.mxu0 %vm324_vm0, %v2538_v36 }
  0xe3   : > { %4100 = vmatprep.mubr.msk.f32.mxu1 %vm324_vm0, %v2155_v39  ;;  %4146 = vmatprep.mubr.msk.f32.mxu0 %vm324_vm0, %v2539_v40 }
  0xe4   : > { %v4903_v45 = vpop.f32.mrf.mxu0  ;;  %v4905_v46 = vpop.f32.mrf.mxu1 }
  0xe6   : > { %v4909_v50 = vpop.f32.mrf.mxu0  ;;  %v4911_v51 = vpop.f32.mrf.mxu1  ;;  %4101 = vmatmul.mubr.msk.f32.gmra.mxu1 %vm324_vm0, %v2156_v43  ;;  %4147 = vmatmul.mubr.msk.f32.gmra.mxu0 %vm324_vm0, %v2540_v44 }
  0xe7   : > { %4103 = vmatprep.mubr.msk.f32.mxu1 %vm324_vm0, %v2157_v48  ;;  %4149 = vmatprep.mubr.msk.f32.mxu0 %vm324_vm0, %v2541_v49 }
  0xe8   : > { %v4919_v54 = vpop.f32.mrf.mxu0  ;;  %v4921_v47 = vpop.f32.mrf.mxu1 }
  0xea   : > { %v4925_v58 = vpop.f32.mrf.mxu0  ;;  %v4927_v59 = vpop.f32.mrf.mxu1  ;;  %4104 = vmatmul.mubr.msk.f32.gmra.mxu1 %vm324_vm0, %v2158_v52  ;;  %4150 = vmatmul.mubr.msk.f32.gmra.mxu0 %vm324_vm0, %v2542_v53 }
  0xeb   : > { %4106 = vmatprep.mubr.msk.f32.mxu1 %vm324_vm0, %v2159_v55  ;;  %4152 = vmatprep.mubr.msk.f32.mxu0 %vm324_vm0, %v2543_v56 }
  0xec   : > { %v527_v61 = vpop.f32.mrf.mxu0  ;;  %v4935_v62 = vpop.f32.mrf.mxu1 }
  0xee   : > { %v3821_v1 = vpop.f32.mrf.mxu0  ;;  %v4939_v2 = vpop.f32.mrf.mxu1  ;;  %4107 = vmatmul.mubr.msk.f32.gmra.mxu1 %vm324_vm0, %v2160_v60  ;;  %4153 = vmatmul.mubr.msk.f32.gmra.mxu0 %vm324_vm0, %v2544_v57 }
  0xef   : > { %4109 = vmatprep.mubr.msk.f32.mxu1 %vm324_vm0, %v2161_v63  ;;  %4155 = vmatprep.mubr.msk.f32.mxu0 %vm324_vm0, %v2545_v0 }
  0xf0   : > { %v537_v5 = vpop.f32.mrf.mxu0  ;;  %v4947_v6 = vpop.f32.mrf.mxu1 }
  0xf2   : > { %v3824_v8 = vpop.f32.mrf.mxu0  ;;  %v4950_v9 = vpop.f32.mrf.mxu1  ;;  %4110 = vmatmul.mubr.msk.f32.gmra.mxu1 %vm324_vm0, %v2162_v3  ;;  %4156 = vmatmul.mubr.msk.f32.gmra.mxu0 %vm324_vm0, %v2546_v4 }
  0xf3   : > { %4158 = vmatprep.mubr.msk.f32.mxu0 %vm324_vm0, %v2547_v7 }
  0xf4   : > { %v547_v11 = vpop.f32.mrf.mxu0  ;;  %v4956_v12 = vpop.f32.mrf.mxu1 }
  0xf6   : > { %v3827_v14 = vpop.f32.mrf.mxu0  ;;  %v3858_v15 = vpop.f32.mrf.mxu1  ;;  %4159 = vmatmul.mubr.msk.f32.gmra.mxu0 %vm324_vm0, %v2548_v10 }
  0xf7   : > { %v814_v16 = vadd.f32 %v3858_v15, %v4861_v25  ;;  %4161 = vmatprep.mubr.msk.f32.mxu0 %vm324_vm0, %v2549_v13 }
  0xf8   : > { %v557_v18 = vpop.f32.mrf.mxu0  ;;  %v808_v19 = vpop.f32.mrf.mxu1 }
  0xf9   : > { %v809_v20 = vadd.f32 %v808_v19, %v4871_v29 }
  0xfa   : > { %v3830_v21 = vpop.f32.mrf.mxu0  ;;  %v3861_v22 = vpop.f32.mrf.mxu1  ;;  %4162 = vmatmul.mubr.msk.f32.gmra.mxu0 %vm324_vm0, %v2550_v17 }
  0xfb   : > { %v824_v23 = vadd.f32 %v3861_v22, %v4877_v33 }
  0xfc   : > { %v567_v24 = vpop.f32.mrf.mxu0  ;;  %v818_v27 = vpop.f32.mrf.mxu1 }
  0xfd   : > { %v819_v28 = vadd.f32 %v818_v27, %v4887_v37 }
  0xfe   : > { %v3864_v31 = vpop.f32.mrf.mxu1  ;;  %v3910_v32 = vpop.f32.mrf.mxu0 }
  0xff   : > { %v834_v25 = vadd.f32 %v3864_v31, %v4893_v41  ;;  %v4968_v35 = vadd.f32 %v3910_v32, %v814_v16 }
 0x100   : > { %v828_v36 = vpop.f32.mrf.mxu1  ;;  %v1164_v39 = vpop.f32.mrf.mxu0 }
 0x101   : > { %v829_v29 = vadd.f32 %v828_v36, %v4903_v45  ;;  %v4971_v40 = vadd.f32 %v1164_v39, %v809_v20 }
 0x102   : > { %v3867_v43 = vpop.f32.mrf.mxu1  ;;  %v3913_v44 = vpop.f32.mrf.mxu0 }
 0x103   : > { %v844_v33 = vadd.f32 %v3867_v43, %v4909_v50  ;;  %v4974_v48 = vadd.f32 %v3913_v44, %v824_v23 }
 0x104   : > { %v838_v49 = vpop.f32.mrf.mxu1  ;;  %v1174_v37 = vpop.f32.mrf.mxu0 }
 0x105   : > { %v839_v52 = vadd.f32 %v838_v49, %v4919_v54  ;;  %v4977_v53 = vadd.f32 %v1174_v37, %v819_v28 }
 0x106   : > { %v3870_v41 = vpop.f32.mrf.mxu1  ;;  %v3916_v55 = vpop.f32.mrf.mxu0 }
 0x107   : > { %v854_v56 = vadd.f32 %v3870_v41, %v4925_v58  ;;  %v4980_v60 = vadd.f32 %v3916_v55, %v834_v25 }
 0x108   : > { %v848_v45 = vpop.f32.mrf.mxu1  ;;  %v1184_v57 = vpop.f32.mrf.mxu0 }
 0x109   : > { %v849_v63 = vadd.f32 %v848_v45, %v527_v61  ;;  %v4982_v0 = vadd.f32 %v1184_v57, %v829_v29 }
 0x10a   : > { %v3873_v50 = vpop.f32.mrf.mxu1  ;;  %v3919_v3 = vpop.f32.mrf.mxu0 }
 0x10b   : > { %v864_v4 = vadd.f32 %v3873_v50, %v3821_v1  ;;  %v4984_v7 = vadd.f32 %v3919_v3, %v844_v33 }
 0x10c   : > { %v858_v10 = vpop.f32.mrf.mxu1  ;;  %v1194_v54 = vpop.f32.mrf.mxu0 }
 0x10d   : > { %v859_v13 = vadd.f32 %v858_v10, %v537_v5  ;;  %v4986_v15 = vadd.f32 %v1194_v54, %v839_v52 }
 0x10e   : > { %v3876_v16 = vpop.f32.mrf.mxu1  ;;  %v3922_v17 = vpop.f32.mrf.mxu0 }
 0x10f   : > { %v874_v58 = vadd.f32 %v3876_v16, %v3824_v8  ;;  %v4988_v19 = vadd.f32 %v3922_v17, %v854_v56 }
 0x110   : > { %v868_v20 = vpop.f32.mrf.mxu1  ;;  %v1204_v22 = vpop.f32.mrf.mxu0 }
 0x111   : > { %v869_v61 = vadd.f32 %v868_v20, %v547_v11  ;;  %v4990_v23 = vadd.f32 %v1204_v22, %v849_v63 }
 0x112   : > { %v3879_v27 = vpop.f32.mrf.mxu1  ;;  %v3925_v28 = vpop.f32.mrf.mxu0 }
 0x113   : > { %v884_v1 = vadd.f32 %v3879_v27, %v3827_v14  ;;  %v4992_v31 = vadd.f32 %v3925_v28, %v864_v4 }
 0x114   : > { %v878_v32 = vpop.f32.mrf.mxu1  ;;  %v1214_v25 = vpop.f32.mrf.mxu0 }
 0x115   : > { %v879_v5 = vadd.f32 %v878_v32, %v557_v18  ;;  %v4994_v36 = vadd.f32 %v1214_v25, %v859_v13 }
 0x116   : > { %v3882_v39 = vpop.f32.mrf.mxu1  ;;  %v3928_v29 = vpop.f32.mrf.mxu0 }
 0x117   : > { %v894_v8 = vadd.f32 %v3882_v39, %v3830_v21  ;;  %v4996_v43 = vadd.f32 %v3928_v29, %v874_v58 }
 0x118   : > { %v888_v44 = vpop.f32.mrf.mxu1  ;;  %v1224_v33 = vpop.f32.mrf.mxu0 }
 0x119   : > { %v889_v11 = vadd.f32 %v888_v44, %v567_v24  ;;  %v4998_v49 = vadd.f32 %v1224_v33, %v869_v61  ;;  %v4311_v33 = vmov 0.0  }
 0x11a   : > { %v3885_v37 = vpop.f32.mrf.mxu1  ;;  %v3931_v52 = vpop.f32.mrf.mxu0  ;;  %4164 = vmatprep.subr.mxu1 %v4311_v33  ;;  %4196 = vmatprep.mubr.msk.f32.mxu1 %vm4312_vm1, %v4311_v33 }
 0x11b   : > { %v904_v14 = vadd.f32 %v3885_v37, %v4863_v26  ;;  %v5001_v41 = vadd.f32 %v3931_v52, %v884_v1 }
 0x11c   : > { %v898_v55 = vpop.f32.mrf.mxu1  ;;  %v1234_v18 = vpop.f32.mrf.mxu0 }
 0x11d   : > { %v899_v56 = vadd.f32 %v898_v55, %v4873_v30  ;;  %v5004_v45 = vadd.f32 %v1234_v18, %v879_v5 }
 0x11e   : > { %v3888_v21 = vpop.f32.mrf.mxu1  ;;  %v3934_v57 = vpop.f32.mrf.mxu0 }
 0x11f   : > { %v914_v63 = vadd.f32 %v3888_v21, %v4879_v34  ;;  %v5007_v50 = vadd.f32 %v3934_v57, %v894_v8 }
 0x120   : > { %v908_v24 = vpop.f32.mrf.mxu1  ;;  %v1244_v3 = vpop.f32.mrf.mxu0 }
 0x121   : > { %v909_v4 = vadd.f32 %v908_v24, %v4889_v38  ;;  %v5010_v10 = vadd.f32 %v1244_v3, %v889_v11  ;;  %v3118_v24 = vld [vmem:[%s5376_s4 + $0x60] sm:$0xff] }
 0x122   : > { %v3891_v26 = vpop.f32.mrf.mxu1  ;;  %v3937_v54 = vpop.f32.mrf.mxu0 }
 0x123   : > { %v924_v13 = vadd.f32 %v3891_v26, %v4895_v42  ;;  %v5013_v16 = vadd.f32 %v3937_v54, %v904_v14 }
 0x124   : > { %v918_v30 = vpop.f32.mrf.mxu1  ;;  %v1254_v17 = vpop.f32.mrf.mxu0 }
 0x125   : > { %v919_v58 = vadd.f32 %v918_v30, %v4905_v46  ;;  %v5016_v20 = vadd.f32 %v1254_v17, %v899_v56 }
 0x126   : > { %v3894_v34 = vpop.f32.mrf.mxu1  ;;  %v3940_v22 = vpop.f32.mrf.mxu0 }
 0x127   : > { %v934_v61 = vadd.f32 %v3894_v34, %v4911_v51  ;;  %v5019_v27 = vadd.f32 %v3940_v22, %v914_v63  ;;  %v3121_v51 = vld [vmem:[%s5376_s4 + $0x78] sm:$0xff] }
 0x128   : > { %v928_v38 = vpop.f32.mrf.mxu1  ;;  %v1264_v28 = vpop.f32.mrf.mxu0  ;;  %4165 = vmatpush3.msra.mxu1 %v3121_v51 }
 0x129   : > { %v929_v1 = vadd.f32 %v928_v38, %v4921_v47  ;;  %v5022_v32 = vadd.f32 %v1264_v28, %v909_v4  ;;  %v3120_v47 = vld [vmem:[%s5376_s4 + $0x70] sm:$0xff]  ;;  %4166 = vmatprep.subr.mxu1 %v4311_v33 }
 0x12a   : > { %v3897_v42 = vpop.f32.mrf.mxu1  ;;  %v3943_v25 = vpop.f32.mrf.mxu0  ;;  %4167 = vmatpush3.msra.mxu1 %v3120_v47 }
 0x12b   : > { %v944_v5 = vadd.f32 %v3897_v42, %v4927_v59  ;;  %v5025_v39 = vadd.f32 %v3943_v25, %v924_v13  ;;  %4168 = vmatprep.subr.mxu1 %v4311_v33 }
 0x12c   : > { %v938_v46 = vpop.f32.mrf.mxu1  ;;  %v1274_v29 = vpop.f32.mrf.mxu0 }
 0x12d   : > { %v939_v8 = vadd.f32 %v938_v46, %v4935_v62  ;;  %v5031_v44 = vadd.f32 %v1274_v29, %v919_v58 }
 0x12e   : > { %v3900_v59 = vpop.f32.mrf.mxu1  ;;  %v3946_v11 = vpop.f32.mrf.mxu0 }
 0x12f   : > { %v954_v37 = vadd.f32 %v3900_v59, %v4939_v2  ;;  %v5038_v52 = vadd.f32 %v3946_v11, %v934_v61  ;;  %v3119_v2 = vld [vmem:[%s5376_s4 + $0x68] sm:$0xff] }
 0x130   : > { %v948_v14 = vpop.f32.mrf.mxu1  ;;  %v1284_v62 = vpop.f32.mrf.mxu0  ;;  %4169 = vmatpush3.msra.mxu1 %v3119_v2 }
 0x131   : > { %v949_v55 = vadd.f32 %v948_v14, %v4947_v6  ;;  %v5042_v18 = vadd.f32 %v1284_v62, %v929_v1  ;;  %4170 = vmatprep.subr.mxu1 %v4311_v33  ;;  %v3117_v1 = vld [vmem:[%s5376_s4 + $0x58] sm:$0xff] }
 0x132   : > { %v3903_v56 = vpop.f32.mrf.mxu1  ;;  %v3949_v21 = vpop.f32.mrf.mxu0  ;;  %4171 = vmatpush3.msra.mxu1 %v3118_v24 }
 0x133   : > { %v964_v57 = vadd.f32 %v3903_v56, %v4950_v9  ;;  %v5046_v63 = vadd.f32 %v3949_v21, %v944_v5  ;;  %4172 = vmatprep.subr.mxu1 %v4311_v33 }
 0x134   : > { %v958_v3 = vpop.f32.mrf.mxu1  ;;  %v1294_v6 = vpop.f32.mrf.mxu0  ;;  %4173 = vmatpush3.msra.mxu1 %v3117_v1 }
 0x135   : > { %v959_v4 = vadd.f32 %v958_v3, %v4956_v12  ;;  %v5055_v26 = vadd.f32 %v1294_v6, %v939_v8  ;;  %4174 = vmatprep.subr.mxu1 %v4311_v33 }
 0x136   : > { %v3952_v9 = vpop.f32.mrf.mxu0  ;;  %v3962_v54 = vpop.f32.mrf.mxu1 }
 0x137   : > { %v5058_v13 = vadd.f32 %v3952_v9, %v954_v37  ;;  %v1712_v30 = vadd.f32 %v3962_v54, %v4968_v35  ;;  %v3116_v35 = vld [vmem:[%s5376_s4 + $0x50] sm:$0xff] }
 0x138   : > { %v1304_v17 = vpop.f32.mrf.mxu0  ;;  %v1552_v58 = vpop.f32.mrf.mxu1  ;;  %4175 = vmatpush3.msra.mxu1 %v3116_v35  ;;  %v3109_v35 = vld [vmem:[%s5376_s4 + $0x18] sm:$0xff] }
 0x139   : > { %v5062_v34 = vadd.f32 %v1304_v17, %v949_v55  ;;  %v1711_v22 = vadd.f32 %v1552_v58, %v4971_v40  ;;  %4176 = vmatprep.subr.mxu1 %v4311_v33 }
 0x13a   : > { %v3955_v12 = vpop.f32.mrf.mxu0  ;;  %v3965_v61 = vpop.f32.mrf.mxu1 }
 0x13b   : > { %v5065_v38 = vadd.f32 %v3955_v12, %v964_v57  ;;  %v1714_v28 = vadd.f32 %v3965_v61, %v4974_v48  ;;  %v3111_v12 = vld [vmem:[%s5376_s4 + $0x28] sm:$0xff] }
 0x13c   : > { %v1314_v42 = vpop.f32.mrf.mxu0  ;;  %v1562_v25 = vpop.f32.mrf.mxu1 }
 0x13d   : > { %v5074_v5 = vadd.f32 %v1314_v42, %v959_v4  ;;  %v1713_v40 = vadd.f32 %v1562_v25, %v4977_v53  ;;  %v3115_v53 = vld [vmem:[%s5376_s4 + $0x48] sm:$0xff]  ;;  %v3112_v4 = vld [vmem:[%s5376_s4 + $0x30] sm:$0xff] }
 0x13e   : > { %v3968_v46 = vpop.f32.mrf.mxu1  ;;  %v4014_v29 = vpop.f32.mrf.mxu0  ;;  %4177 = vmatpush3.msra.mxu1 %v3115_v53 }
 0x13f   : > { %v1716_v48 = vadd.f32 %v3968_v46, %v4980_v60  ;;  %v5079_v51 = vadd.f32 %v4014_v29, %v1712_v30  ;;  %v3114_v60 = vld [vmem:[%s5376_s4 + $0x40] sm:$0xff]  ;;  %4178 = vmatprep.subr.mxu1 %v4311_v33  ;;  %v3108_v46 = vld [vmem:[%s5376_s4 + $0x10] sm:$0xff] }
 0x140   : > { %v1572_v8 = vpop.f32.mrf.mxu1  ;;  %v1940_v47 = vpop.f32.mrf.mxu0  ;;  %4179 = vmatpush3.msra.mxu1 %v3114_v60 }
 0x141   : > { %v1715_v59 = vadd.f32 %v1572_v8, %v4982_v0  ;;  %v5083_v11 = vadd.f32 %v1940_v47, %v1711_v22  ;;  %4180 = vmatprep.subr.mxu1 %v4311_v33 }
 0x142   : > { %v3971_v37 = vpop.f32.mrf.mxu1  ;;  %v4017_v14 = vpop.f32.mrf.mxu0 }
 0x143   : > { %v1718_v62 = vadd.f32 %v3971_v37, %v4984_v7  ;;  %v5092_v55 = vadd.f32 %v4017_v14, %v1714_v28  ;;  %v3113_v7 = vld [vmem:[%s5376_s4 + $0x38] sm:$0xff] }
 0x144   : > { %v1582_v56 = vpop.f32.mrf.mxu1  ;;  %v1950_v21 = vpop.f32.mrf.mxu0  ;;  %4181 = vmatpush3.msra.mxu1 %v3113_v7 }
 0x145   : > { %v1717_v0 = vadd.f32 %v1582_v56, %v4986_v15  ;;  %v5096_v57 = vadd.f32 %v1950_v21, %v1713_v40  ;;  %4182 = vmatprep.subr.mxu1 %v4311_v33 }
 0x146   : > { %v3974_v2 = vpop.f32.mrf.mxu1  ;;  %v4020_v24 = vpop.f32.mrf.mxu0  ;;  %4183 = vmatpush3.msra.mxu1 %v3112_v4 }
 0x147   : > { %v1720_v3 = vadd.f32 %v3974_v2, %v4988_v19  ;;  %v5100_v6 = vadd.f32 %v4020_v24, %v1716_v48  ;;  %4184 = vmatprep.subr.mxu1 %v4311_v33 }
 0x148   : > { %v1592_v15 = vpop.f32.mrf.mxu1  ;;  %v1960_v9 = vpop.f32.mrf.mxu0  ;;  %4185 = vmatpush3.msra.mxu1 %v3111_v12 }
 0x149   : > { %v1719_v54 = vadd.f32 %v1592_v15, %v4990_v23  ;;  %v5109_v30 = vadd.f32 %v1960_v9, %v1715_v59  ;;  %4186 = vmatprep.subr.mxu1 %v4311_v33 }
 0x14a   : > { %v3977_v19 = vpop.f32.mrf.mxu1  ;;  %v4023_v17 = vpop.f32.mrf.mxu0 }
 0x14b   : > { %v1722_v58 = vadd.f32 %v3977_v19, %v4992_v31  ;;  %v5113_v22 = vadd.f32 %v4023_v17, %v1718_v62  ;;  %v3110_v31 = vld [vmem:[%s5376_s4 + $0x20] sm:$0xff] }
 0x14c   : > { %v1602_v61 = vpop.f32.mrf.mxu1  ;;  %v1970_v28 = vpop.f32.mrf.mxu0  ;;  %4187 = vmatpush3.msra.mxu1 %v3110_v31 }
 0x14d   : > { %v1721_v23 = vadd.f32 %v1602_v61, %v4994_v36  ;;  %v5120_v1 = vadd.f32 %v1970_v28, %v1717_v0  ;;  %4188 = vmatprep.subr.mxu1 %v4311_v33 }
 0x14e   : > { %v3980_v42 = vpop.f32.mrf.mxu1  ;;  %v4026_v25 = vpop.f32.mrf.mxu0  ;;  %4189 = vmatpush3.msra.mxu1 %v3109_v35 }
 0x14f   : > { %v1724_v36 = vadd.f32 %v3980_v42, %v4996_v43  ;;  %v5131_v40 = vadd.f32 %v4026_v25, %v1720_v3  ;;  %4190 = vmatprep.subr.mxu1 %v4311_v33  ;;  %v3107_v43 = vld [vmem:[%s5376_s4 + $0x8] sm:$0xff] }
 0x150   : > { %v1612_v29 = vpop.f32.mrf.mxu1  ;;  %v1980_v48 = vpop.f32.mrf.mxu0  ;;  %4191 = vmatpush3.msra.mxu1 %v3108_v46 }
 0x151   : > { %v1723_v8 = vadd.f32 %v1612_v29, %v4998_v49  ;;  %v5138_v47 = vadd.f32 %v1980_v48, %v1719_v54  ;;  %4192 = vmatprep.subr.mxu1 %v4311_v33  ;;  %v3106_v49 = vld [vmem:[%s5376_s4] sm:$0xff] }
 0x152   : > { %v3983_v59 = vpop.f32.mrf.mxu1  ;;  %v4029_v37 = vpop.f32.mrf.mxu0  ;;  %4193 = vmatpush3.msra.mxu1 %v3107_v43 }
 0x153   : > { %v1726_v14 = vadd.f32 %v3983_v59, %v5001_v41  ;;  %v5145_v53 = vadd.f32 %v4029_v37, %v1722_v58  ;;  %4194 = vmatprep.subr.mxu1 %v4311_v33 }
 0x154   : > { %v1622_v60 = vpop.f32.mrf.mxu1  ;;  %v1990_v62 = vpop.f32.mrf.mxu0  ;;  %4195 = vmatpush3.msra.mxu1 %v3106_v49 }
 0x155   : > { %v1725_v56 = vadd.f32 %v1622_v60, %v5004_v45  ;;  %v5152_v21 = vadd.f32 %v1990_v62, %v1721_v23 }
 0x156   : > { %v3986_v0 = vpop.f32.mrf.mxu1  ;;  %v4032_v2 = vpop.f32.mrf.mxu0 }
 0x157   : > { %v1728_v41 = vadd.f32 %v3986_v0, %v5007_v50  ;;  %v5156_v24 = vadd.f32 %v4032_v2, %v1724_v36 }
 0x158   : > { %v1632_v3 = vpop.f32.mrf.mxu1  ;;  %v2000_v7 = vpop.f32.mrf.mxu0 }
 0x159   : > { %v1727_v4 = vadd.f32 %v1632_v3, %v5010_v10  ;;  %v5159_v15 = vadd.f32 %v2000_v7, %v1723_v8 }
 0x15a   : > { %v3989_v9 = vpop.f32.mrf.mxu1  ;;  %v4035_v54 = vpop.f32.mrf.mxu0 }
 0x15b   : > { %v1730_v45 = vadd.f32 %v3989_v9, %v5013_v16  ;;  %v5162_v19 = vadd.f32 %v4035_v54, %v1726_v14 }
 0x15c   : > { %v1642_v33 = vpop.f32.mrf.mxu1  ;;  %v2010_v17 = vpop.f32.mrf.mxu0 }
 0x15d   : > { %v1729_v58 = vadd.f32 %v1642_v33, %v5016_v20  ;;  %v5165_v12 = vadd.f32 %v2010_v17, %v1725_v56 }
 0x15e   : > { %v3992_v50 = vpop.f32.mrf.mxu1  ;;  %v4038_v61 = vpop.f32.mrf.mxu0 }
 0x15f   : > { %v1732_v28 = vadd.f32 %v3992_v50, %v5019_v27  ;;  %v5168_v23 = vadd.f32 %v4038_v61, %v1728_v41 }
 0x160   : > { %v1652_v10 = vpop.f32.mrf.mxu1  ;;  %v2020_v31 = vpop.f32.mrf.mxu0 }
 0x161   : > { %v1731_v35 = vadd.f32 %v1652_v10, %v5022_v32  ;;  %v5171_v42 = vadd.f32 %v2020_v31, %v1727_v4 }
 0x162   : > { %v3995_v16 = vpop.f32.mrf.mxu1  ;;  %v4041_v25 = vpop.f32.mrf.mxu0 }
 0x163   : > { %v1734_v36 = vadd.f32 %v3995_v16, %v5025_v39  ;;  %v5174_v46 = vadd.f32 %v4041_v25, %v1730_v45 }
 0x164   : > { %v1662_v20 = vpop.f32.mrf.mxu1  ;;  %v2030_v29 = vpop.f32.mrf.mxu0 }
 0x165   : > { %v1733_v48 = vadd.f32 %v1662_v20, %v5031_v44  ;;  %v5177_v8 = vadd.f32 %v2030_v29, %v1729_v58 }
 0x166   : > { %v3998_v27 = vpop.f32.mrf.mxu1  ;;  %v4044_v43 = vpop.f32.mrf.mxu0 }
 0x167   : > { %v1736_v59 = vadd.f32 %v3998_v27, %v5038_v52  ;;  %v5180_v37 = vadd.f32 %v4044_v43, %v1732_v28 }
 0x168   : > { %v1672_v32 = vpop.f32.mrf.mxu1  ;;  %v2040_v14 = vpop.f32.mrf.mxu0 }
 0x169   : > { %v1735_v49 = vadd.f32 %v1672_v32, %v5042_v18  ;;  %v5183_v60 = vadd.f32 %v2040_v14, %v1731_v35 }
 0x16a   : > { %v4001_v39 = vpop.f32.mrf.mxu1  ;;  %v4047_v62 = vpop.f32.mrf.mxu0 }
 0x16b   : > { %v1738_v56 = vadd.f32 %v4001_v39, %v5046_v63  ;;  %v5186_v0 = vadd.f32 %v4047_v62, %v1734_v36 }
 0x16c   : > { %v1682_v44 = vpop.f32.mrf.mxu1  ;;  %v2050_v2 = vpop.f32.mrf.mxu0 }
 0x16d   : > { %v1737_v41 = vadd.f32 %v1682_v44, %v5055_v26  ;;  %v5189_v3 = vadd.f32 %v2050_v2, %v1733_v48  ;;  %v5214_v48 = vpop.permute.xlu0 %2984 }
 0x16e   : > { %v4004_v52 = vpop.f32.mrf.mxu1  ;;  %v4050_v7 = vpop.f32.mrf.mxu0 }
 0x16f   : > { %v1740_v4 = vadd.f32 %v4004_v52, %v5058_v13  ;;  %v5192_v9 = vadd.f32 %v4050_v7, %v1736_v59  ;;  %v5219_v59 = vld [vmem:[%s5374_s2] ss:$0 sm:$0xff] }
 0x170   : > { %v5194_v18 = vpop.f32.mrf.mxu1  ;;  %v2060_v54 = vpop.f32.mrf.mxu0 }
 0x171   : > { %v5196_v45 = vadd.f32 %v2060_v54, %v1735_v49  ;;  %v5226_v54 = vpop.permute.xlu1 %2994 }
 0x172   : > { %v4007_v63 = vpop.f32.mrf.mxu1  ;;  %v4053_v33 = vpop.f32.mrf.mxu0 }
 0x173   : > { %v1742_v17 = vadd.f32 %v4007_v63, %v5065_v38  ;;  %v5199_v58 = vadd.f32 %v4053_v33, %v1738_v56  ;;  %v5228_v63 = vpop.permute.xlu0 %2989 }
 0x174   : > { %v5201_v26 = vpop.f32.mrf.mxu1  ;;  %v2070_v50 = vpop.f32.mrf.mxu0 }
 0x175   : > { %v5203_v61 = vadd.f32 %v2070_v50, %v1737_v41 }
 0x176   : > { %v4056_v28 = vpop.f32.mrf.mxu0  ;;  %v4066_v13 = vpop.f32.mrf.mxu1 }
 0x177   : > { %v5205_v10 = vadd.f32 %v4056_v28, %v1740_v4  ;;  %v2488_v29 = vadd.f32 %v4066_v13, %v5079_v51 }
 0x178   : > { %v5207_v31 = vpop.f32.mrf.mxu0  ;;  %v2328_v35 = vpop.f32.mrf.mxu1 }
 0x179   : > { %v2487_v32 = vadd.f32 %v2328_v35, %v5083_v11 }
 0x17a   : > { %v4059_v16 = vpop.f32.mrf.mxu0  ;;  %v4069_v25 = vpop.f32.mrf.mxu1 }
 0x17b   : > { %v5209_v36 = vadd.f32 %v4059_v16, %v1742_v17  ;;  %v2490_v62 = vadd.f32 %v4069_v25, %v5092_v55 }
 0x17c   : > { %v5211_v20 = vpop.f32.mrf.mxu0  ;;  %v2338_v38 = vpop.f32.mrf.mxu1 }
 0x17d   : > { %v2489_v41 = vadd.f32 %v2338_v38, %v5096_v57 }
 0x17e   : > { %v4072_v27 = vpop.f32.mrf.mxu1  ;;  %v4118_v43 = vpop.f32.mrf.mxu0 }
 0x17f   : > { %v2876_v14 = vadd.f32 %v4118_v43, %v2488_v29  ;;  %v2492_v28 = vadd.f32 %v4072_v27, %v5100_v6 }
 0x180   : > { %v2348_v49 = vpop.f32.mrf.mxu1  ;;  %v2716_v39 = vpop.f32.mrf.mxu0 }
 0x181   : > { %v2915_v56 = vadd.f32 %v5219_v59, %v2876_v14  ;;  %v2875_v44 = vadd.f32 %v2716_v39, %v2487_v32  ;;  %v2491_v38 = vadd.f32 %v2348_v49, %v5109_v30 }
 0x182   : > { %v4075_v51 = vpop.f32.mrf.mxu1  ;;  %v4121_v2 = vpop.f32.mrf.mxu0 }
 0x183   : > { %v2947_v52 = vmax.f32 %v2915_v56, 0.0  ;;  %v2914_v7 = vadd.f32 %v5219_v59, %v2875_v44  ;;  %v2878_v4 = vadd.f32 %v4121_v2, %v2490_v62  ;;  %v2494_v14 = vadd.f32 %v4075_v51, %v5113_v22  ;;  %v5237_v44 = vpop.permute.xlu1 %2999 }
 0x184   : > { %v2358_v11 = vpop.f32.mrf.mxu1  ;;  %v2726_v33 = vpop.f32.mrf.mxu0 }
 0x185   : > { %v2946_v17 = vmax.f32 %v2914_v7, 0.0  ;;  %v2917_v55 = vadd.f32 %v5219_v59, %v2878_v4  ;;  %v2877_v50 = vadd.f32 %v2726_v33, %v2489_v41  ;;  %v3003_v25 = vmul.f32 %v5228_v63, %v2947_v52 }
 0x186   : > { %v4078_v13 = vpop.f32.mrf.mxu1  ;;  %v4124_v35 = vpop.f32.mrf.mxu0  ;;  %v2493_v7 = vadd.f32 %v2358_v11, %v5120_v1 }
 0x187   : > { %v3002_v57 = vmul.f32 %v5214_v48, %v2946_v17  ;;  %v2916_v16 = vadd.f32 %v5219_v59, %v2877_v50  ;;  %v2880_v29 = vadd.f32 %v4124_v35, %v2492_v28  ;;  %v2949_v39 = vmax.f32 %v2917_v55, 0.0 }
 0x188   : > { %v2368_v43 = vpop.f32.mrf.mxu1  ;;  %v2736_v32 = vpop.f32.mrf.mxu0  ;;  %v2496_v28 = vadd.f32 %v4078_v13, %v5131_v40 }
 0x189   : > { %v2948_v62 = vmax.f32 %v2916_v16, 0.0  ;;  %v3034_v56 = vadd.f32 %v3003_v25, %v3002_v57  ;;  %v2919_v6 = vadd.f32 %v5219_v59, %v2880_v29  ;;  %v2879_v27 = vadd.f32 %v2736_v32, %v2491_v38 }
 0x18a   : > { %v4081_v2 = vpop.f32.mrf.mxu1  ;;  %v4127_v41 = vpop.f32.mrf.mxu0  ;;  %v3005_v17 = vmul.f32 %v5237_v44, %v2949_v39  ;;  %v2495_v38 = vadd.f32 %v2368_v43, %v5138_v47 }
 0x18b   : > { %v3004_v52 = vmul.f32 %v5226_v54, %v2948_v62  ;;  %v2882_v30 = vadd.f32 %v4127_v41, %v2494_v14  ;;  %v2951_v49 = vmax.f32 %v2919_v6, 0.0  ;;  %v2918_v4 = vadd.f32 %v5219_v59, %v2879_v27 }
 0x18c   : > { %v2378_v33 = vpop.f32.mrf.mxu1  ;;  %v2746_v22 = vpop.f32.mrf.mxu0 }
 0x18d   : > { %v3035_v51 = vadd.f32 %v3034_v56, %v3004_v52  ;;  %v2921_v55 = vadd.f32 %v5219_v59, %v2882_v30  ;;  %v2881_v50 = vadd.f32 %v2746_v22, %v2493_v7  ;;  %v2950_v35 = vmax.f32 %v2918_v4, 0.0 }
 0x18e   : > { %v4084_v57 = vpop.f32.mrf.mxu1  ;;  %v4130_v16 = vpop.f32.mrf.mxu0  ;;  %v3007_v25 = vmul.f32 %v5228_v63, %v2951_v49  ;;  %v2498_v56 = vadd.f32 %v4081_v2, %v5145_v53  ;;  %v2497_v43 = vadd.f32 %v2378_v33, %v5152_v21 }
 0x18f   : > { %v3036_v1 = vadd.f32 %v3035_v51, %v3005_v17  ;;  %v2920_v11 = vadd.f32 %v5219_v59, %v2881_v50  ;;  %v3006_v29 = vmul.f32 %v5214_v48, %v2950_v35  ;;  %v2884_v32 = vadd.f32 %v4130_v16, %v2496_v28 }
 0x190   : > { %v2388_v14 = vpop.f32.mrf.mxu1  ;;  %v2756_v39 = vpop.f32.mrf.mxu0  ;;  %v2953_v6 = vmax.f32 %v2921_v55, 0.0  ;;  %v2500_v50 = vadd.f32 %v4084_v57, %v5156_v24 }
 0x191   : > { %v3037_v62 = vrot.slane %v3036_v1, 4  ;;  %v2952_v40 = vmax.f32 %v2920_v11, 0.0  ;;  %v3043_v13 = vadd.f32 %v3007_v25, %v3006_v29  ;;  %v2923_v27 = vadd.f32 %v5219_v59, %v2884_v32 }
 0x192   : > { %v2883_v41 = vadd.f32 %v2756_v39, %v2495_v38  ;;  %v4087_v7 = vpop.f32.mrf.mxu1  ;;  %v4133_v52 = vpop.f32.mrf.mxu0  ;;  %v3009_v53 = vmul.f32 %v5237_v44, %v2953_v6  ;;  %v2499_v21 = vadd.f32 %v2388_v14, %v5159_v15 }
 0x193   : > { %v3038_v30 = vadd.f32 %v3037_v62, %v3036_v1  ;;  %v3008_v49 = vmul.f32 %v5226_v54, %v2952_v40  ;;  %v2886_v47 = vadd.f32 %v4133_v52, %v2498_v56  ;;  %v2955_v4 = vmax.f32 %v2923_v27, 0.0 }
 0x194   : > { %v2922_v22 = vadd.f32 %v5219_v59, %v2883_v41  ;;  %v2398_v51 = vpop.f32.mrf.mxu1  ;;  %v2766_v17 = vpop.f32.mrf.mxu0  ;;  %v2502_v24 = vadd.f32 %v4087_v7, %v5162_v19 }
 0x195   : > { %v3044_v2 = vadd.f32 %v3043_v13, %v3008_v49  ;;  %v2925_v55 = vadd.f32 %v5219_v59, %v2886_v47  ;;  %v2885_v35 = vadd.f32 %v2766_v17, %v2497_v43  ;;  %v3039_v11 = vrot.slane %v3038_v30, 2 }
 0x196   : > { %v2954_v28 = vmax.f32 %v2922_v22, 0.0  ;;  %v4090_v16 = vpop.f32.mrf.mxu1  ;;  %v4136_v1 = vpop.f32.mrf.mxu0  ;;  %v3011_v33 = vmul.f32 %v5228_v63, %v2955_v4  ;;  %v2501_v49 = vadd.f32 %v2398_v51, %v5165_v12 }
 0x197   : > { %v3045_v25 = vadd.f32 %v3044_v2, %v3009_v53  ;;  %v2924_v29 = vadd.f32 %v5219_v59, %v2885_v35  ;;  %v2888_v32 = vadd.f32 %v4136_v1, %v2500_v50  ;;  %v2957_v57 = vmax.f32 %v2925_v55, 0.0 }
 0x198   : > { %v3010_v38 = vmul.f32 %v5214_v48, %v2954_v28  ;;  %v2408_v39 = vpop.f32.mrf.mxu1  ;;  %v2776_v62 = vpop.f32.mrf.mxu0  ;;  %v3040_v14 = vadd.f32 %v3039_v11, %v3038_v30  ;;  %v2504_v30 = vadd.f32 %v4090_v16, %v5168_v23 }
 0x199   : > { %v3046_v56 = vrot.slane %v3045_v25, 4  ;;  %v2956_v40 = vmax.f32 %v2924_v29, 0.0  ;;  %v2927_v13 = vadd.f32 %v5219_v59, %v2888_v32  ;;  %v2887_v27 = vadd.f32 %v2776_v62, %v2499_v21 }
 0x19a   : > { %v3052_v6 = vadd.f32 %v3011_v33, %v3010_v38  ;;  %v4093_v41 = vpop.f32.mrf.mxu1  ;;  %v4139_v15 = vpop.f32.mrf.mxu0  ;;  %v3013_v55 = vmul.f32 %v5237_v44, %v2957_v57  ;;  %v3041_v35 = vrot.slane %v3040_v14, 1  ;;  %v2503_v11 = vadd.f32 %v2408_v39, %v5171_v42 }
 0x19b   : > { %v3047_v52 = vadd.f32 %v3046_v56, %v3045_v25  ;;  %v2890_v47 = vadd.f32 %v4139_v15, %v2502_v24  ;;  %v3012_v43 = vmul.f32 %v5226_v54, %v2956_v40  ;;  %v2959_v4 = vmax.f32 %v2927_v13, 0.0 }
 0x19c   : > { %v2926_v22 = vadd.f32 %v5219_v59, %v2887_v27  ;;  %v2418_v17 = vpop.f32.mrf.mxu1  ;;  %v2786_v19 = vpop.f32.mrf.mxu0  ;;  %v2506_v23 = vadd.f32 %v4093_v41, %v5174_v46 }
 0x19d   : > { %v3048_v7 = vrot.slane %v3047_v52, 2  ;;  %v2929_v53 = vadd.f32 %v5219_v59, %v2890_v47  ;;  %v2889_v2 = vadd.f32 %v2786_v19, %v2501_v49  ;;  %v3053_v50 = vadd.f32 %v3052_v6, %v3012_v43 }
 0x19e   : > { %v2958_v28 = vmax.f32 %v2926_v22, 0.0  ;;  %v4096_v12 = vpop.f32.mrf.mxu1  ;;  %v4142_v51 = vpop.f32.mrf.mxu0  ;;  %v3015_v33 = vmul.f32 %v5228_v63, %v2959_v4  ;;  %v2505_v15 = vadd.f32 %v2418_v17, %v5177_v8  ;;  %v3042_v47 = vadd.f32 %v3041_v35, %v3040_v14 }
 0x19f   : > { %v3049_v1 = vadd.f32 %v3048_v7, %v3047_v52  ;;  %v2928_v25 = vadd.f32 %v5219_v59, %v2889_v2  ;;  %v3054_v21 = vadd.f32 %v3053_v50, %v3013_v55  ;;  %v2892_v29 = vadd.f32 %v4142_v51, %v2504_v30 }
 0x1a0   : > { %v3014_v38 = vmul.f32 %v5214_v48, %v2958_v28  ;;  %v2428_v32 = vpop.f32.mrf.mxu1  ;;  %v2796_v62 = vpop.f32.mrf.mxu0  ;;  %v2961_v16 = vmax.f32 %v2929_v53, 0.0  ;;  %v2508_v8 = vadd.f32 %v4096_v12, %v5180_v37  ;;  %v1739_v28 = vadd.f32 %v5194_v18, %v5062_v34 }
 0x1a1   : > { %v3050_v56 = vrot.slane %v3049_v1, 1  ;;  %v2960_v24 = vmax.f32 %v2928_v25, 0.0  ;;  %v3055_v57 = vrot.slane %v3054_v21, 4  ;;  %v2931_v40 = vadd.f32 %v5219_v59, %v2892_v29 }
 0x1a2   : > { %v3061_v6 = vadd.f32 %v3015_v33, %v3014_v38  ;;  %v2891_v42 = vadd.f32 %v2796_v62, %v2503_v11  ;;  %v4099_v39 = vpop.f32.mrf.mxu1  ;;  %v4145_v13 = vpop.f32.mrf.mxu0  ;;  %v3017_v19 = vmul.f32 %v5237_v44, %v2961_v16  ;;  %v2507_v35 = vadd.f32 %v2428_v32, %v5183_v60 }
 0x1a3   : > { %v3051_v27 = vadd.f32 %v3050_v56, %v3049_v1  ;;  %v3016_v52 = vmul.f32 %v5226_v54, %v2960_v24  ;;  %v2894_v49 = vadd.f32 %v4145_v13, %v2506_v23  ;;  %v3056_v43 = vadd.f32 %v3055_v57, %v3054_v21 }
 0x1a4   : > { %v2963_v4 = vmax.f32 %v2931_v40, 0.0  ;;  %v2930_v46 = vadd.f32 %v5219_v59, %v2891_v42  ;;  %v2438_v41 = vpop.f32.mrf.mxu1  ;;  %v2806_v22 = vpop.f32.mrf.mxu0  ;;  %v2510_v29 = vadd.f32 %v4099_v39, %v5186_v0  ;;  %v1741_v24 = vadd.f32 %v5201_v26, %v5074_v5 }
 0x1a5   : > { %v3062_v7 = vadd.f32 %v3061_v6, %v3016_v52  ;;  %v2933_v53 = vadd.f32 %v5219_v59, %v2894_v49  ;;  %v2893_v2 = vadd.f32 %v2806_v22, %v2505_v15  ;;  %v3057_v55 = vrot.slane %v3056_v43, 2 }
 0x1a6   : > { %v2962_v17 = vmax.f32 %v2930_v46, 0.0  ;;  %v4102_v50 = vpop.f32.mrf.mxu1  ;;  %v4148_v30 = vpop.f32.mrf.mxu0  ;;  %v3138_v14 = vsel %vm3137_vm2, %v3051_v27, %v3042_v47  ;;  %v3019_v25 = vmul.f32 %v5228_v63, %v2963_v4  ;;  %v2509_v0 = vadd.f32 %v2438_v41, %v5189_v3 }
 0x1a7   : > { %v3063_v51 = vadd.f32 %v3062_v7, %v3017_v19  ;;  %v2932_v1 = vadd.f32 %v5219_v59, %v2893_v2  ;;  %v3058_v11 = vadd.f32 %v3057_v55, %v3056_v43  ;;  %v2896_v33 = vadd.f32 %v4148_v30, %v2508_v8 }
 0x1a8   : > { %v3018_v21 = vmul.f32 %v5214_v48, %v2962_v17  ;;  %v2448_v37 = vpop.f32.mrf.mxu1  ;;  %v2816_v12 = vpop.f32.mrf.mxu0  ;;  %v2965_v62 = vmax.f32 %v2933_v53, 0.0  ;;  %v2512_v5 = vadd.f32 %v4102_v50, %v5192_v9  ;;  %v2127_v3 = vadd.f32 %v5207_v31, %v1739_v28 }
 0x1a9   : > { %v3064_v38 = vrot.slane %v3063_v51, 4  ;;  %v2964_v56 = vmax.f32 %v2932_v1, 0.0  ;;  %v3059_v23 = vrot.slane %v3058_v11, 1  ;;  %v2935_v18 = vadd.f32 %v5219_v59, %v2896_v33 }
 0x1aa   : > { %v3070_v34 = vadd.f32 %v3019_v25, %v3018_v21  ;;  %v2895_v60 = vadd.f32 %v2816_v12, %v2507_v35  ;;  %v4105_v32 = vpop.f32.mrf.mxu1  ;;  %v4151_v16 = vpop.f32.mrf.mxu0  ;;  %v3021_v49 = vmul.f32 %v5237_v44, %v2965_v62  ;;  %v2511_v53 = vadd.f32 %v2448_v37, %v5196_v45 }
 0x1ab   : > { %v3065_v57 = vadd.f32 %v3064_v38, %v3063_v51  ;;  %v3020_v6 = vmul.f32 %v5226_v54, %v2964_v56  ;;  %v2898_v40 = vadd.f32 %v4151_v16, %v2510_v29  ;;  %v3060_v42 = vadd.f32 %v3059_v23, %v3058_v11 }
 0x1ac   : > { %v2967_v39 = vmax.f32 %v2935_v18, 0.0  ;;  %v2934_v13 = vadd.f32 %v5219_v59, %v2895_v60  ;;  %v2458_v27 = vpop.f32.mrf.mxu1  ;;  %v2826_v15 = vpop.f32.mrf.mxu0  ;;  %v2514_v35 = vadd.f32 %v4105_v32, %v5199_v58  ;;  %v2129_v12 = vadd.f32 %v5211_v20, %v1741_v24 }
 0x1ad   : > { %v3066_v52 = vrot.slane %v3065_v57, 2  ;;  %v3071_v47 = vadd.f32 %v3070_v34, %v3020_v6  ;;  %v2937_v43 = vadd.f32 %v5219_v59, %v2898_v40  ;;  %v2897_v4 = vadd.f32 %v2826_v15, %v2509_v0 }
 0x1ae   : > { %v2966_v26 = vmax.f32 %v2934_v13, 0.0  ;;  %v4108_v46 = vpop.f32.mrf.mxu1  ;;  %v4154_v22 = vpop.f32.mrf.mxu0  ;;  %v3140_v19 = vsel %vm3139_vm3, %v3060_v42, %v3138_v14  ;;  %v3023_v2 = vmul.f32 %v5228_v63, %v2967_v39  ;;  %v2513_v33 = vadd.f32 %v2458_v27, %v5203_v61 }
 0x1af   : > { %v3067_v41 = vadd.f32 %v3066_v52, %v3065_v57  ;;  %v3072_v7 = vadd.f32 %v3071_v47, %v3021_v49  ;;  %v2936_v8 = vadd.f32 %v5219_v59, %v2897_v4  ;;  %v2900_v17 = vadd.f32 %v4154_v22, %v2512_v5 }
 0x1b0   : > { %v3022_v55 = vmul.f32 %v5214_v48, %v2966_v26  ;;  %v2468_v9 = vpop.f32.mrf.mxu1  ;;  %v2836_v50 = vpop.f32.mrf.mxu0  ;;  %v2969_v14 = vmax.f32 %v2937_v43, 0.0  ;;  %v2516_v34 = vadd.f32 %v4108_v46, %v5205_v10 }
 0x1b1   : > { %v3068_v30 = vrot.slane %v3067_v41, 1  ;;  %v3073_v51 = vrot.slane %v3072_v7, 4  ;;  %v2968_v31 = vmax.f32 %v2936_v8, 0.0  ;;  %v2939_v28 = vadd.f32 %v5219_v59, %v2900_v17 }
 0x1b2   : > { %v3079_v1 = vadd.f32 %v3023_v2, %v3022_v55  ;;  %v2899_v11 = vadd.f32 %v2836_v50, %v2511_v53  ;;  %v4157_v45 = vpop.f32.mrf.mxu0  ;;  %v4111_v58 = vpop.f32.mrf.mxu1  ;;  %v3025_v32 = vmul.f32 %v5237_v44, %v2969_v14  ;;  %v2515_v6 = vadd.f32 %v2468_v9, %v2127_v3 }
 0x1b3   : > { %v3069_v25 = vadd.f32 %v3068_v30, %v3067_v41  ;;  %v3074_v21 = vadd.f32 %v3073_v51, %v3072_v7  ;;  %v2902_v37 = vadd.f32 %v4157_v45, %v2514_v35  ;;  %v3024_v38 = vmul.f32 %v5226_v54, %v2968_v31 }
 0x1b4   : > { %v2971_v29 = vmax.f32 %v2939_v28, 0.0  ;;  %v2938_v62 = vadd.f32 %v5219_v59, %v2899_v11  ;;  %v2846_v56 = vpop.f32.mrf.mxu0  ;;  %v2518_v13 = vadd.f32 %v4111_v58, %v5209_v36  ;;  %v2478_v27 = vpop.f32.mrf.mxu1 }
 0x1b5   : > { %v3075_v23 = vrot.slane %v3074_v21, 2  ;;  %v2941_v18 = vadd.f32 %v5219_v59, %v2902_v37  ;;  %v2901_v60 = vadd.f32 %v2846_v56, %v2513_v33  ;;  %v3080_v16 = vadd.f32 %v3079_v1, %v3024_v38 }
 0x1b6   : > { %v2970_v61 = vmax.f32 %v2938_v62, 0.0  ;;  %v4160_v57 = vpop.f32.mrf.mxu0  ;;  %v3142_v20 = vsel %vm3141_vm4, %v3069_v25, %v3140_v19  ;;  %v3027_v39 = vmul.f32 %v5228_v63, %v2971_v29  ;;  %v2517_v19 = vadd.f32 %v2478_v27, %v2129_v12 }
 0x1b7   : > { %v3076_v24 = vadd.f32 %v3075_v23, %v3074_v21  ;;  %v2940_v40 = vadd.f32 %v5219_v59, %v2901_v60  ;;  %v2904_v42 = vadd.f32 %v4160_v57, %v2516_v34  ;;  %v3081_v0 = vadd.f32 %v3080_v16, %v3025_v32 }
 0x1b8   : > { %v3026_v10 = vmul.f32 %v5214_v48, %v2970_v61  ;;  %v2856_v15 = vpop.f32.mrf.mxu0  ;;  %v2973_v49 = vmax.f32 %v2941_v18, 0.0 }
 0x1b9   : > { %v3077_v52 = vrot.slane %v3076_v24, 1  ;;  %v2972_v47 = vmax.f32 %v2940_v40, 0.0  ;;  %v2943_v43 = vadd.f32 %v5219_v59, %v2904_v42  ;;  %v3082_v5 = vrot.slane %v3081_v0, 4 }
 0x1ba   : > { %v3088_v26 = vadd.f32 %v3027_v39, %v3026_v10  ;;  %v2903_v4 = vadd.f32 %v2856_v15, %v2515_v6  ;;  %v4163_v46 = vpop.f32.mrf.mxu0  ;;  %v3029_v55 = vmul.f32 %v5237_v44, %v2973_v49 }
 0x1bb   : > { %v3078_v22 = vadd.f32 %v3077_v52, %v3076_v24  ;;  %v3028_v3 = vmul.f32 %v5226_v54, %v2972_v47  ;;  %v2906_v41 = vadd.f32 %v4163_v46, %v2518_v13  ;;  %v3083_v7 = vadd.f32 %v3082_v5, %v3081_v0 }
 0x1bc   : > { %v2975_v53 = vmax.f32 %v2943_v43, 0.0  ;;  %v2942_v36 = vadd.f32 %v5219_v59, %v2903_v4  ;;  %v2866_v2 = vpop.f32.mrf.mxu0 }
 0x1bd   : > { %v3089_v8 = vadd.f32 %v3088_v26, %v3028_v3  ;;  %v2945_v17 = vadd.f32 %v5219_v59, %v2906_v41  ;;  %v2905_v9 = vadd.f32 %v2866_v2, %v2517_v19  ;;  %v3084_v50 = vrot.slane %v3083_v7, 2 }
 0x1be   : > { %v2974_v30 = vmax.f32 %v2942_v36, 0.0  ;;  %v3144_v51 = vsel %vm3143_vm5, %v3078_v22, %v3142_v20  ;;  %v3031_v31 = vmul.f32 %v5228_v63, %v2975_v53 }
 0x1bf   : > { %v3090_v35 = vadd.f32 %v3089_v8, %v3029_v55  ;;  %v2944_v14 = vadd.f32 %v5219_v59, %v2905_v9  ;;  %v3085_v1 = vadd.f32 %v3084_v50, %v3083_v7  ;;  %v2977_v45 = vmax.f32 %v2945_v17, 0.0 }
 0x1c0   : > { %v3030_v28 = vmul.f32 %v5214_v48, %v2974_v30 }
 0x1c1   : > { %v3091_v11 = vrot.slane %v3090_v35, 4  ;;  %v2976_v25 = vmax.f32 %v2944_v14, 0.0  ;;  %v3086_v21 = vrot.slane %v3085_v1, 1  ;;  %v3033_v62 = vmul.f32 %v5237_v44, %v2977_v45  ;;  %v3540_v44 = vld [vmem:[%s5377_s5] ss:$0 sm:$0xff] }
 0x1c2   : > { %v3097_v33 = vadd.f32 %v3031_v31, %v3030_v28 }
 0x1c3   : > { %v3092_v37 = vadd.f32 %v3091_v11, %v3090_v35  ;;  %v3032_v12 = vmul.f32 %v5226_v54, %v2976_v25  ;;  %v3087_v38 = vadd.f32 %v3086_v21, %v3085_v1 }
 0x1c5   : > { %v3093_v29 = vrot.slane %v3092_v37, 2  ;;  %v3098_v58 = vadd.f32 %v3097_v33, %v3032_v12  ;;  %v3146_v59 = vsel %vm3145_vm6, %v3087_v38, %v3144_v51 }
 0x1c7   : > { %v3094_v56 = vadd.f32 %v3093_v29, %v3092_v37  ;;  %v3099_v63 = vadd.f32 %v3098_v58, %v3033_v62 }
 0x1c9   : > { %v3100_v23 = vrot.slane %v3099_v63, 4  ;;  %v3095_v48 = vrot.slane %v3094_v56, 1 }
 0x1cb   : > { %v3101_v34 = vadd.f32 %v3100_v23, %v3099_v63  ;;  %v3096_v18 = vadd.f32 %v3095_v48, %v3094_v56 }
 0x1cd   : > { %v3102_v60 = vrot.slane %v3101_v34, 2  ;;  %v3148_v32 = vsel %vm3147_vm7, %v3096_v18, %v3146_v59 }
 0x1cf   : > { %v3103_v16 = vadd.f32 %v3102_v60, %v3101_v34 }
 0x1d1   : > { %v3104_v54 = vrot.slane %v3103_v16, 1 }
 0x1d3   : > { %v3105_v61 = vadd.f32 %v3104_v54, %v3103_v16 }
 0x1d5   : > { %v3150_v57 = vsel %vm3149_vm8, %v3105_v61, %v3148_v32 }
 0x1d6   : > { %4197 = vmatmul.mubr.f32.vlgmr.msra.gmra.mxu1 %v3150_v57 }
 0x296   : > { %v3218_v20 = vpop.f32.mrf.mxu1 }
 0x297   : > { %v3219_v24 = vadd.f32 %v3540_v44, %v3218_v20 }
 0x298   : > { %v4198_v6 = vpop.f32.mrf.mxu1 }
 0x299   : > { %3222 = vst [vmem:[%s247_s15] sm:$0xff] %v3219_v24 }
 0x29a   : > { %4261 = shalt.err (!%p4258_p3)
}
 0x29b   : > { %s4262_s9 = scalar_lea.hbm %s5337_s19, 128  ;;  %s4266_s12 = scalar_lea.hbm %s5378_s6, 256 }
 0x29c   : > { %p4263_p4 = scmp.ne.s32.totalorder %s5337_s19, %s4262_s9  ;;  %p4267_p9 = scmp.lt.s32.totalorder %s5337_s19, %s5378_s6 }
 0x29d   : > { %p4268_p10 = scmp.lt.s32.totalorder %s4266_s12, %s4262_s9 }
 0x29e   : > { %p4264_p7 = pnand %p4263_p4, %p4387_p5 }
 0x29f   : > { %p4269_p11 = por %p4268_p10, %p4267_p9 }
 0x2a0   : > { %p4265_p8 = pneg %p4264_p7 }
 0x2a2   : > { %p4270_p12 = pnand %p4269_p11, %p4265_p8 }
 0x2a4   : > { %4273 = shalt.err (!%p4270_p12)
}
 0x2a5   : > { %4204 = dma.vmem_to_hbm [thread:$0]  (%p4387_p5), %s3238_s16, 128, %s5337_s19, %s3224_s20  }
 0x2a6 PF: > { %p4210_p13 = scmp.ge.s32.totalorder %s4308_s24, 2  ;;  %s3249_s15 = sand.u32 1, %s4296_s21  }
 0x2a7   : > { %s3250_s17 = scalar_lea.sflag [#allocation3], %s3249_s15 }
 0x2a8   : > { %p4207_p0 = pnand %p4210_p13, %p4391_p6 }
 0x2aa   : > { %p4208_p1 = pneg %p4207_p0 }
 0x2ac   : > { %4291 = dma.done.wait (%p4208_p1), %s3250_s17, 128  }
 0x2ad   : > { %4293 = vsyncadd (%p4208_p1), %s3250_s17, 4294967168  ;;  %p16_p2 = scmp.ge.s32.totalorder %s4374_s27, 4   ;;  %s5381_s21 = smov %s4300_s22 }
 0x2ae   : > { %s5382_s22 = smov %s4304_s23  ;;  %s5383_s23 = smov %s4385_s30 }
 0x2af   : > { %s5384_s24 = smov %s4374_s27  ;;  %18 = sbr.rel (!%p16_p2) target bundleno = 3 (0x3), region = 85 }
 0x2b4   :  { %3255 = vsyncpa [#allocation3], 1 }
 0x2b5   :  { %3257 = vsyncpa [#allocation3 + $0x1], 1 }

</bundles_post_ra>
